<compile_context>
chip_gen: v5e
topology: v5e:2x2
jax: 0.10.0
libtpu: 0.0.40
codegen_flags: <defaults>
</compile_context>

<pallas_src>
import jax
import jax.numpy as jnp
from jax.experimental import pallas as pl
from jax.experimental.pallas import tpu as pltpu

INPUT_CHANNELS = 2
NUM_CLASSES = 5
NUM_LEVELS = 3
KERNEL_SIZE = 3
NUM_FILTERS = 32

GROUP = 4                                        # batch rows packed per 128-lane vreg
LANES = GROUP * NUM_FILTERS                      # 128: lane-dense activations everywhere
TAP_LANES = KERNEL_SIZE * GROUP * INPUT_CHANNELS  # 24: pre-stacked level-0 conv1 taps
# shared causal left-pad rows for all in-kernel convs, rounded to a sublane tile
MAXPAD = ((KERNEL_SIZE - 1) * 2 ** (NUM_LEVELS - 1) + 7) // 8 * 8   # = 8


# ----------------------------------------------------------------------------
# Pallas kernel: whole TCN forward for one block of lane-packed batch groups
# ----------------------------------------------------------------------------
def tcn_kernel(x_ref, len_ref,
               w1a_ref, b1a_ref, w2a_ref, b2a_ref, wda_ref, bda_ref,
               w1b_ref, b1b_ref, w2b_ref, b2b_ref,
               w1c_ref, b1c_ref, w2c_ref, b2c_ref,
               wf_ref, bf_ref,
               out_ref, hp_ref):
    f32 = jnp.float32
    Gb, S, _ = x_ref.shape
    rows = Gb * S

    # Time index within each sequence, full lane width.  Reused by every conv's
    # causal mask and by the pooling mask (computed once, hoisted).
    t3 = jax.lax.broadcasted_iota(jnp.int32, (Gb, S, LANES), 1)
    t2 = t3.reshape(rows, LANES)

    # Zero the shared causal-padding rows of the scratch once per invocation.
    hp_ref[0:MAXPAD, :] = jnp.zeros((MAXPAD, LANES), f32)

    def conv128(h2d, w_ref, b_ref, dilation):
        """Causal dilated conv on the packed (rows,128) activations.

        h is stored once into the zero-padded scratch; each tap is a static
        ref-slice of that scratch (no pad-concat / lane-concat temporaries).
        K accumulating (rows,128)x(128,128) matmuls.  Rows whose within-sequence
        time index is < shift are masked to zero (they would otherwise read the
        previous sequence's tail inside this block)."""
        hp_ref[MAXPAD:MAXPAD + rows, :] = h2d
        acc = jnp.dot(h2d, w_ref[KERNEL_SIZE - 1],
                      preferred_element_type=f32)             # shift-0 tap
        for j in range(KERNEL_SIZE - 1):
            s = (KERNEL_SIZE - 1 - j) * dilation
            tap = hp_ref[MAXPAD - s:MAXPAD - s + rows, :]
            tap = jnp.where(t2 >= s, tap, 0.0)
            acc = acc + jnp.dot(tap, w_ref[j], preferred_element_type=f32)
        return acc + b_ref[...]

    # ---- level 0 (dilation 1): conv1 taps pre-stacked host-side -------------
    x2d = x_ref[...].reshape(rows, TAP_LANES)
    o = jnp.maximum(jnp.dot(x2d, w1a_ref[...], preferred_element_type=f32)
                    + b1a_ref[...], 0.0)
    # dropout1: eval-mode identity
    o = jnp.maximum(conv128(o, w2a_ref, b2a_ref, 1), 0.0)
    # dropout2: eval-mode identity
    res = jnp.dot(x2d, wda_ref[...], preferred_element_type=f32) + bda_ref[...]
    h = jnp.maximum(o + res, 0.0)

    # ---- levels 1, 2 (dilation 2, 4): identity residual ---------------------
    def block(h, w1_ref, b1_ref, w2_ref, b2_ref, d):
        o = jnp.maximum(conv128(h, w1_ref, b1_ref, d), 0.0)
        o = jnp.maximum(conv128(o, w2_ref, b2_ref, d), 0.0)
        return jnp.maximum(o + h, 0.0)

    h = block(h, w1b_ref, b1b_ref, w2b_ref, b2b_ref, 2)
    h = block(h, w1c_ref, b1c_ref, w2c_ref, b2c_ref, 4)

    # ---- masked temporal mean + block-diagonal FC ----------------------------
    lens = len_ref[...]                                        # (Gb, 128) int32
    h3 = h.reshape(Gb, S, LANES)
    pooled = jnp.sum(jnp.where(t3 < lens[:, None, :], h3, 0.0), axis=1)   # (Gb,128)
    inv_len = 1.0 / jnp.maximum(lens.astype(f32), 1.0)  # exact; len==0 only on pad rows
    pooled = pooled * inv_len
    out_ref[...] = (jnp.dot(pooled, wf_ref[...], preferred_element_type=f32)
                    + bf_ref[...]).astype(out_ref.dtype)       # (Gb, 128) lane-dense


# ----------------------------------------------------------------------------
# Parameters (natural shapes) + packing into the lane-packed kernel layout
# ----------------------------------------------------------------------------
def init_params(key):
    """Synthetic parameters in the module's natural shapes.
    A real PyTorch Conv1d weight (out_c, in_c, k) maps to our (k, in_c, out_c)
    via w.transpose(2, 1, 0)."""
    params = {}
    for i in range(NUM_LEVELS):
        in_c = INPUT_CHANNELS if i == 0 else NUM_FILTERS
        key, k1, k2, k3, k4, k5, k6 = jax.random.split(key, 7)
        params[f"w1_{i}"] = 0.1 * jax.random.normal(
            k1, (KERNEL_SIZE, in_c, NUM_FILTERS), jnp.float32)
        params[f"b1_{i}"] = 0.1 * jax.random.normal(k2, (1, NUM_FILTERS), jnp.float32)
        params[f"w2_{i}"] = 0.1 * jax.random.normal(
            k3, (KERNEL_SIZE, NUM_FILTERS, NUM_FILTERS), jnp.float32)
        params[f"b2_{i}"] = 0.1 * jax.random.normal(k4, (1, NUM_FILTERS), jnp.float32)
        if in_c != NUM_FILTERS:                                # 1x1 downsample conv
            params[f"wd_{i}"] = 0.1 * jax.random.normal(k5, (in_c, NUM_FILTERS), jnp.float32)
            params[f"bd_{i}"] = 0.1 * jax.random.normal(k6, (1, NUM_FILTERS), jnp.float32)
    key, k1, k2 = jax.random.split(key, 3)
    params["wf"] = 0.1 * jax.random.normal(k1, (NUM_FILTERS, NUM_CLASSES), jnp.float32)
    params["bf"] = 0.1 * jax.random.normal(k2, (1, NUM_CLASSES), jnp.float32)
    return params


def _block_diag(w2d, cols=None):
    """(C, F) -> (GROUP*C, GROUP*cols) block-diagonal (one block per packed batch slot)."""
    C, F = w2d.shape
    cols = F if cols is None else cols
    out = jnp.zeros((GROUP * C, GROUP * cols), jnp.float32)
    for g in range(GROUP):
        out = out.at[g * C:(g + 1) * C, g * cols:g * cols + F].set(w2d)
    return out


def _pack_params(params):
    """Kernel layout (all f32):
       * level-0 conv1 / downsample: flattened over taps -> (K*4*Cin, 128)
       * other convs: per-tap block-diagonal -> (K, 128, 128)
       * biases tiled per group -> (1, 128)
       * FC: block-diagonal (128, 128) with the 5 classes padded to 32 lanes/group."""
    def bd_taps(w3d):                                  # (K, 32, 32) -> (K, 128, 128)
        return jnp.stack([_block_diag(w3d[j]) for j in range(KERNEL_SIZE)], axis=0)

    def bias(b):                                       # (1, n) -> (1, 128)
        padded = jnp.zeros((1, NUM_FILTERS), jnp.float32).at[:, :b.shape[1]].set(b)
        return jnp.tile(padded, (1, GROUP))

    out = []
    # level 0: conv1 uses the pre-stacked taps, lane order (tap j, slot g, channel c)
    w1 = params["w1_0"]                                # (K, Cin, F)
    w1a = jnp.concatenate([_block_diag(w1[j]) for j in range(KERNEL_SIZE)], axis=0)
    out += [w1a, bias(params["b1_0"])]
    out += [bd_taps(params["w2_0"]), bias(params["b2_0"])]
    wda = jnp.zeros((TAP_LANES, LANES), jnp.float32)
    wda = wda.at[(KERNEL_SIZE - 1) * GROUP * INPUT_CHANNELS:, :].set(
        _block_diag(params["wd_0"]))                   # downsample uses the shift-0 tap
    out += [wda, bias(params["bd_0"])]
    # levels 1, 2
    for i in (1, 2):
        out += [bd_taps(params[f"w1_{i}"]), bias(params[f"b1_{i}"]),
                bd_taps(params[f"w2_{i}"]), bias(params[f"b2_{i}"])]
    # FC
    out += [_block_diag(params["wf"], cols=NUM_FILTERS), bias(params["bf"])]
    return out


def _resident_spec(shape):
    nd = len(shape)
    return pl.BlockSpec(shape, lambda i, _nd=nd: (0,) * _nd)   # constant block -> resident


def _pick_block_g(G, S):
    """Groups (of 4 packed batch rows) per grid step.

    Target ~2048 packed rows (block_g*S) per step == ~8K original batch*time rows,
    so the ~0.35us/step pipeline overhead is negligible while every live f32
    temporary (rows x 128 lanes) is ~1 MiB -> comfortably inside v7x's 64 MiB VMEM.
    The result is either == G (single step) or a multiple of 8 so every 2D
    BlockSpec obeys the (8,128) rule; larger batches are split into >= 2 steps so
    the 'parallel' axis can occupy both TensorCores on v7x."""
    target = max(1, 2048 // max(S, 1))
    if target >= G:
        if G >= 16:
            bg = (((G + 1) // 2) + 7) // 8 * 8
            return max(8, min(bg, G))
        return G
    bg = max(8, (target // 8) * 8)
    return min(bg, G)


# ----------------------------------------------------------------------------
# Wrapper
# ----------------------------------------------------------------------------
def tcn_forward(x, lengths, params, *, block_g=None):
    """x: (B, S, INPUT_CHANNELS) f32, lengths: (B,) int.  Returns (B, NUM_CLASSES)."""
    B, S, Cin = x.shape
    assert Cin == INPUT_CHANNELS

    S_pad = ((S + 7) // 8) * 8            # free (Gb,S,128)<->(rows,128) reshapes in-kernel
    B4 = ((B + 3) // 4) * 4               # 4 batch rows per lane group
    G0 = B4 // GROUP

    x_p = jnp.zeros((B4, S_pad, Cin), jnp.float32).at[:B, :S, :].set(
        x.astype(jnp.float32))
    len_p = jnp.zeros((B4,), jnp.int32).at[:B].set(lengths.astype(jnp.int32))

    # Lane packing: batch row b -> (group b//4, slot b%4).
    xg = x_p.reshape(G0, GROUP, S_pad, Cin)
    # Pre-stack the level-0 conv1 taps host-side (causal shifts, dilation 1).
    taps = []
    for j in range(KERNEL_SIZE):
        s = KERNEL_SIZE - 1 - j
        taps.append(jnp.pad(xg, ((0, 0), (0, 0), (s, 0), (0, 0)))[:, :, :S_pad, :])
    x_taps = (jnp.stack(taps, axis=0)                  # (K, G0, 4, S, Cin)
              .transpose(1, 3, 0, 2, 4)                # (G0, S, K, 4, Cin)
              .reshape(G0, S_pad, TAP_LANES))
    lens_lane = jnp.repeat(len_p.reshape(G0, GROUP), NUM_FILTERS, axis=1)  # (G0, 128)

    if block_g is None:
        block_g = _pick_block_g(G0, S_pad)
    n_steps = -(-G0 // block_g)
    Gp = n_steps * block_g
    if Gp != G0:
        x_taps = jnp.pad(x_taps, ((0, Gp - G0), (0, 0), (0, 0)))
        lens_lane = jnp.pad(lens_lane, ((0, Gp - G0), (0, 0)))

    packed = _pack_params(params)
    inputs = [x_taps, lens_lane] + packed

    # Advisory cost estimate so XLA can schedule around the custom call.
    rows_total = Gp * S_pad
    flops = int(2 * rows_total * (2 * TAP_LANES * LANES
                                  + (2 * NUM_LEVELS - 1) * KERNEL_SIZE * LANES * LANES)
                + 2 * Gp * LANES * LANES)
    bytes_accessed = int(sum(int(a.size) * a.dtype.itemsize for a in inputs)
                         + Gp * LANES * 4)

    out = pl.pallas_call(
        tcn_kernel,
        out_shape=jax.ShapeDtypeStruct((Gp, LANES), jnp.float32),
        grid=(n_steps,),
        in_specs=[
            pl.BlockSpec((block_g, S_pad, TAP_LANES), lambda i: (i, 0, 0)),
            pl.BlockSpec((block_g, LANES), lambda i: (i, 0)),
        ] + [_resident_spec(p.shape) for p in packed],
        out_specs=pl.BlockSpec((block_g, LANES), lambda i: (i, 0)),
        scratch_shapes=[pltpu.VMEM((MAXPAD + block_g * S_pad, LANES), jnp.float32)],
        compiler_params=pltpu.CompilerParams(
            # batch-group steps are independent -> shard across TCs on multi-TC chips
            dimension_semantics=("parallel",),
            # explicit budget: safe on v5e/v6e (128 MiB) and v7x (64 MiB physical)
            vmem_limit_bytes=48 * 1024 * 1024),
        cost_estimate=pl.CostEstimate(flops=flops, transcendentals=0,
                                      bytes_accessed=bytes_accessed),
    )(*inputs)

    # Unpack: (Gp, 128) -> (B4, 32) -> (B, NUM_CLASSES)
    logits = out[:G0].reshape(G0 * GROUP, NUM_FILTERS)[:B, :NUM_CLASSES]
    return logits


# ----------------------------------------------------------------------------
# Pure-JAX reference mirroring the PyTorch module exactly (symmetric padding,
# trim to L only at the end of each block) — used for a numeric sanity check.
# ----------------------------------------------------------------------------
def tcn_reference(x, lengths, params):
    def conv1d(h, w, b, dilation):
        bsz, length, _ = h.shape
        k = w.shape[0]
        pad = (k - 1) * dilation
        l_out = length + 2 * pad - dilation * (k - 1)
        hp = jnp.pad(h, ((0, 0), (pad, pad), (0, 0)))
        out = jnp.zeros((bsz, l_out, w.shape[-1]), jnp.float32)
        for j in range(k):
            out = out + hp[:, j * dilation: j * dilation + l_out, :] @ w[j]
        return out + b

    h = x
    for i in range(NUM_LEVELS):
        d = 2 ** i
        length = h.shape[1]
        o = jax.nn.relu(conv1d(h, params[f"w1_{i}"], params[f"b1_{i}"], d))
        o = jax.nn.relu(conv1d(o, params[f"w2_{i}"], params[f"b2_{i}"], d))
        o = o[:, :length, :]
        res = (h @ params[f"wd_{i}"] + params[f"bd_{i}"]) if f"wd_{i}" in params else h
        h = jax.nn.relu(o + res)
    _, S, _ = h.shape
    mask = (jnp.arange(S)[None, :] < lengths[:, None]).astype(jnp.float32)
    pooled = (h * mask[:, :, None]).sum(axis=1) / lengths[:, None].astype(jnp.float32)
    return pooled @ params["wf"] + params["bf"]


if __name__ == "__main__":
    key = jax.random.PRNGKey(0)
    kx, kp = jax.random.split(key, 2)

    B, S = 2, 16
    x = jax.random.normal(kx, (B, S, INPUT_CHANNELS), jnp.float32)
    lengths = jnp.array([16, 9], dtype=jnp.int32)
    params = init_params(kp)

    logits = jax.block_until_ready(tcn_forward(x, lengths, params))
    assert logits.shape == (B, NUM_CLASSES), logits.shape
    assert bool(jnp.all(jnp.isfinite(logits)))

    ref = tcn_reference(x, lengths, params)
    max_err = float(jnp.max(jnp.abs(logits - ref)))
    # f32 kernel vs f32 reference (MXU may use multi-pass bf16 internally).
    assert max_err < 2e-2, f"max |kernel - reference| = {max_err}"

    print("KERNEL_OK")
</pallas_src>

<mosaic_0001>
module attributes {stable_mosaic.version = 11 : i64} {
  func.func @tcn_kernel(%arg0: i32, %arg1: memref<1x16x24xf32, #tpu.memory_space<vmem>>, %arg2: memref<1x128xi32, #tpu.memory_space<vmem>>, %arg3: memref<24x128xf32, #tpu.memory_space<vmem>>, %arg4: memref<1x128xf32, #tpu.memory_space<vmem>>, %arg5: memref<3x128x128xf32, #tpu.memory_space<vmem>>, %arg6: memref<1x128xf32, #tpu.memory_space<vmem>>, %arg7: memref<24x128xf32, #tpu.memory_space<vmem>>, %arg8: memref<1x128xf32, #tpu.memory_space<vmem>>, %arg9: memref<3x128x128xf32, #tpu.memory_space<vmem>>, %arg10: memref<1x128xf32, #tpu.memory_space<vmem>>, %arg11: memref<3x128x128xf32, #tpu.memory_space<vmem>>, %arg12: memref<1x128xf32, #tpu.memory_space<vmem>>, %arg13: memref<3x128x128xf32, #tpu.memory_space<vmem>>, %arg14: memref<1x128xf32, #tpu.memory_space<vmem>>, %arg15: memref<3x128x128xf32, #tpu.memory_space<vmem>>, %arg16: memref<1x128xf32, #tpu.memory_space<vmem>>, %arg17: memref<128x128xf32, #tpu.memory_space<vmem>>, %arg18: memref<1x128xf32, #tpu.memory_space<vmem>>, %arg19: memref<1x128xf32, #tpu.memory_space<vmem>>, %arg20: memref<24x128xf32, #tpu.memory_space<vmem>>) attributes {dimension_semantics = [#tpu.dimension_semantics<parallel>], iteration_bounds = array<i64: 1>, scalar_prefetch = 0 : i64, scratch_operands = 1 : i64, tpu.core_type = #tpu.core_type<tc>, window_params = [{transform_indices = @transform_0, window_bounds = array<i64: 1, 16, 24>}, {transform_indices = @transform_1, window_bounds = array<i64: 1, 128>}, {pipeline_mode = #tpu.pipeline_mode<synchronous>, transform_indices = @transform_2, window_bounds = array<i64: 24, 128>}, {pipeline_mode = #tpu.pipeline_mode<synchronous>, transform_indices = @transform_3, window_bounds = array<i64: 1, 128>}, {pipeline_mode = #tpu.pipeline_mode<synchronous>, transform_indices = @transform_4, window_bounds = array<i64: 3, 128, 128>}, {pipeline_mode = #tpu.pipeline_mode<synchronous>, transform_indices = @transform_5, window_bounds = array<i64: 1, 128>}, {pipeline_mode = #tpu.pipeline_mode<synchronous>, transform_indices = @transform_6, window_bounds = array<i64: 24, 128>}, {pipeline_mode = #tpu.pipeline_mode<synchronous>, transform_indices = @transform_7, window_bounds = array<i64: 1, 128>}, {pipeline_mode = #tpu.pipeline_mode<synchronous>, transform_indices = @transform_8, window_bounds = array<i64: 3, 128, 128>}, {pipeline_mode = #tpu.pipeline_mode<synchronous>, transform_indices = @transform_9, window_bounds = array<i64: 1, 128>}, {pipeline_mode = #tpu.pipeline_mode<synchronous>, transform_indices = @transform_10, window_bounds = array<i64: 3, 128, 128>}, {pipeline_mode = #tpu.pipeline_mode<synchronous>, transform_indices = @transform_11, window_bounds = array<i64: 1, 128>}, {pipeline_mode = #tpu.pipeline_mode<synchronous>, transform_indices = @transform_12, window_bounds = array<i64: 3, 128, 128>}, {pipeline_mode = #tpu.pipeline_mode<synchronous>, transform_indices = @transform_13, window_bounds = array<i64: 1, 128>}, {pipeline_mode = #tpu.pipeline_mode<synchronous>, transform_indices = @transform_14, window_bounds = array<i64: 3, 128, 128>}, {pipeline_mode = #tpu.pipeline_mode<synchronous>, transform_indices = @transform_15, window_bounds = array<i64: 1, 128>}, {pipeline_mode = #tpu.pipeline_mode<synchronous>, transform_indices = @transform_16, window_bounds = array<i64: 128, 128>}, {pipeline_mode = #tpu.pipeline_mode<synchronous>, transform_indices = @transform_17, window_bounds = array<i64: 1, 128>}, {transform_indices = @transform_18, window_bounds = array<i64: 1, 128>}]} {
    %0 = tpu.iota {dimensions = array<i32: 1>} : vector<1x16x128xi32>
    %1 = vector.shape_cast %0 : vector<1x16x128xi32> to vector<16x128xi32>
    %cst = arith.constant 0.000000e+00 : f32
    %2 = vector.broadcast %cst : f32 to vector<8x128xf32>
    %c0 = arith.constant 0 : index
    %c0_0 = arith.constant 0 : index
    %3 = vector.load %arg20[%c0, %c0_0] : memref<24x128xf32, #tpu.memory_space<vmem>>, vector<8x128xf32>
    tpu.vector_store %arg20[%c0, %c0_0], %2 {strides = array<i32>} : memref<24x128xf32, #tpu.memory_space<vmem>>, vector<8x128xf32>,
    %c0_1 = arith.constant 0 : index
    %c0_2 = arith.constant 0 : index
    %c0_3 = arith.constant 0 : index
    %4 = vector.load %arg1[%c0_1, %c0_2, %c0_3] : memref<1x16x24xf32, #tpu.memory_space<vmem>>, vector<1x16x24xf32>
    %5 = vector.shape_cast %4 : vector<1x16x24xf32> to vector<16x24xf32>
    %c0_4 = arith.constant 0 : index
    %c0_5 = arith.constant 0 : index
    %6 = vector.load %arg3[%c0_4, %c0_5] : memref<24x128xf32, #tpu.memory_space<vmem>>, vector<24x128xf32>
    %cst_6 = arith.constant dense<0.000000e+00> : vector<16x128xf32>
    %7 = tpu.matmul %5, %6, %cst_6 {dimension_numbers = #tpu.dot_dimension_numbers<[1], [0], [0], [1], [0, 0, 1, 1], [], []>} : vector<16x24xf32>, vector<24x128xf32>, vector<16x128xf32> -> vector<16x128xf32>
    %c0_7 = arith.constant 0 : index
    %c0_8 = arith.constant 0 : index
    %8 = vector.load %arg4[%c0_7, %c0_8] : memref<1x128xf32, #tpu.memory_space<vmem>>, vector<1x128xf32>
    %9 = vector.broadcast %8 : vector<1x128xf32> to vector<16x128xf32>
    %10 = arith.addf %7, %9 : vector<16x128xf32>
    %cst_9 = arith.constant 0.000000e+00 : f32
    %11 = vector.broadcast %cst_9 : f32 to vector<16x128xf32>
    %12 = arith.maximumf %10, %11 : vector<16x128xf32>
    %c8 = arith.constant 8 : index
    %c0_10 = arith.constant 0 : index
    %13 = vector.load %arg20[%c8, %c0_10] : memref<24x128xf32, #tpu.memory_space<vmem>>, vector<16x128xf32>
    tpu.vector_store %arg20[%c8, %c0_10], %12 {strides = array<i32>} : memref<24x128xf32, #tpu.memory_space<vmem>>, vector<16x128xf32>,
    %c2 = arith.constant 2 : index
    %c0_11 = arith.constant 0 : index
    %c0_12 = arith.constant 0 : index
    %14 = vector.load %arg5[%c2, %c0_11, %c0_12] : memref<3x128x128xf32, #tpu.memory_space<vmem>>, vector<1x128x128xf32>
    %15 = vector.shape_cast %14 : vector<1x128x128xf32> to vector<128x128xf32>
    %cst_13 = arith.constant dense<0.000000e+00> : vector<16x128xf32>
    %16 = tpu.matmul %12, %15, %cst_13 {dimension_numbers = #tpu.dot_dimension_numbers<[1], [0], [0], [1], [0, 0, 1, 1], [], []>} : vector<16x128xf32>, vector<128x128xf32>, vector<16x128xf32> -> vector<16x128xf32>
    %c6 = arith.constant 6 : index
    %c0_14 = arith.constant 0 : index
    %17 = vector.load %arg20[%c6, %c0_14] : memref<24x128xf32, #tpu.memory_space<vmem>>, vector<16x128xf32>
    %c2_i32 = arith.constant 2 : i32
    %18 = vector.broadcast %c2_i32 : i32 to vector<16x128xi32>
    %19 = arith.cmpi sge, %1, %18 : vector<16x128xi32>
    %cst_15 = arith.constant 0.000000e+00 : f32
    %20 = vector.broadcast %cst_15 : f32 to vector<16x128xf32>
    %21 = arith.select %19, %17, %20 : vector<16x128xi1>, vector<16x128xf32>
    %c0_16 = arith.constant 0 : index
    %c0_17 = arith.constant 0 : index
    %c0_18 = arith.constant 0 : index
    %22 = vector.load %arg5[%c0_16, %c0_17, %c0_18] : memref<3x128x128xf32, #tpu.memory_space<vmem>>, vector<1x128x128xf32>
    %23 = vector.shape_cast %22 : vector<1x128x128xf32> to vector<128x128xf32>
    %cst_19 = arith.constant dense<0.000000e+00> : vector<16x128xf32>
    %24 = tpu.matmul %21, %23, %cst_19 {dimension_numbers = #tpu.dot_dimension_numbers<[1], [0], [0], [1], [0, 0, 1, 1], [], []>} : vector<16x128xf32>, vector<128x128xf32>, vector<16x128xf32> -> vector<16x128xf32>
    %25 = arith.addf %16, %24 : vector<16x128xf32>
    %c7 = arith.constant 7 : index
    %c0_20 = arith.constant 0 : index
    %26 = vector.load %arg20[%c7, %c0_20] : memref<24x128xf32, #tpu.memory_space<vmem>>, vector<16x128xf32>
    %c1_i32 = arith.constant 1 : i32
    %27 = vector.broadcast %c1_i32 : i32 to vector<16x128xi32>
    %28 = arith.cmpi sge, %1, %27 : vector<16x128xi32>
    %cst_21 = arith.constant 0.000000e+00 : f32
    %29 = vector.broadcast %cst_21 : f32 to vector<16x128xf32>
    %30 = arith.select %28, %26, %29 : vector<16x128xi1>, vector<16x128xf32>
    %c1 = arith.constant 1 : index
    %c0_22 = arith.constant 0 : index
    %c0_23 = arith.constant 0 : index
    %31 = vector.load %arg5[%c1, %c0_22, %c0_23] : memref<3x128x128xf32, #tpu.memory_space<vmem>>, vector<1x128x128xf32>
    %32 = vector.shape_cast %31 : vector<1x128x128xf32> to vector<128x128xf32>
    %cst_24 = arith.constant dense<0.000000e+00> : vector<16x128xf32>
    %33 = tpu.matmul %30, %32, %cst_24 {dimension_numbers = #tpu.dot_dimension_numbers<[1], [0], [0], [1], [0, 0, 1, 1], [], []>} : vector<16x128xf32>, vector<128x128xf32>, vector<16x128xf32> -> vector<16x128xf32>
    %34 = arith.addf %25, %33 : vector<16x128xf32>
    %c0_25 = arith.constant 0 : index
    %c0_26 = arith.constant 0 : index
    %35 = vector.load %arg6[%c0_25, %c0_26] : memref<1x128xf32, #tpu.memory_space<vmem>>, vector<1x128xf32>
    %36 = vector.broadcast %35 : vector<1x128xf32> to vector<16x128xf32>
    %37 = arith.addf %34, %36 : vector<16x128xf32>
    %cst_27 = arith.constant 0.000000e+00 : f32
    %38 = vector.broadcast %cst_27 : f32 to vector<16x128xf32>
    %39 = arith.maximumf %37, %38 : vector<16x128xf32>
    %c0_28 = arith.constant 0 : index
    %c0_29 = arith.constant 0 : index
    %40 = vector.load %arg7[%c0_28, %c0_29] : memref<24x128xf32, #tpu.memory_space<vmem>>, vector<24x128xf32>
    %cst_30 = arith.constant dense<0.000000e+00> : vector<16x128xf32>
    %41 = tpu.matmul %5, %40, %cst_30 {dimension_numbers = #tpu.dot_dimension_numbers<[1], [0], [0], [1], [0, 0, 1, 1], [], []>} : vector<16x24xf32>, vector<24x128xf32>, vector<16x128xf32> -> vector<16x128xf32>
    %c0_31 = arith.constant 0 : index
    %c0_32 = arith.constant 0 : index
    %42 = vector.load %arg8[%c0_31, %c0_32] : memref<1x128xf32, #tpu.memory_space<vmem>>, vector<1x128xf32>
    %43 = vector.broadcast %42 : vector<1x128xf32> to vector<16x128xf32>
    %44 = arith.addf %41, %43 : vector<16x128xf32>
    %45 = arith.addf %39, %44 : vector<16x128xf32>
    %cst_33 = arith.constant 0.000000e+00 : f32
    %46 = vector.broadcast %cst_33 : f32 to vector<16x128xf32>
    %47 = arith.maximumf %45, %46 : vector<16x128xf32>
    %c8_34 = arith.constant 8 : index
    %c0_35 = arith.constant 0 : index
    %48 = vector.load %arg20[%c8_34, %c0_35] : memref<24x128xf32, #tpu.memory_space<vmem>>, vector<16x128xf32>
    tpu.vector_store %arg20[%c8_34, %c0_35], %47 {strides = array<i32>} : memref<24x128xf32, #tpu.memory_space<vmem>>, vector<16x128xf32>,
    %c2_36 = arith.constant 2 : index
    %c0_37 = arith.constant 0 : index
    %c0_38 = arith.constant 0 : index
    %49 = vector.load %arg9[%c2_36, %c0_37, %c0_38] : memref<3x128x128xf32, #tpu.memory_space<vmem>>, vector<1x128x128xf32>
    %50 = vector.shape_cast %49 : vector<1x128x128xf32> to vector<128x128xf32>
    %cst_39 = arith.constant dense<0.000000e+00> : vector<16x128xf32>
    %51 = tpu.matmul %47, %50, %cst_39 {dimension_numbers = #tpu.dot_dimension_numbers<[1], [0], [0], [1], [0, 0, 1, 1], [], []>} : vector<16x128xf32>, vector<128x128xf32>, vector<16x128xf32> -> vector<16x128xf32>
    %c4 = arith.constant 4 : index
    %c0_40 = arith.constant 0 : index
    %52 = vector.load %arg20[%c4, %c0_40] : memref<24x128xf32, #tpu.memory_space<vmem>>, vector<16x128xf32>
    %c4_i32 = arith.constant 4 : i32
    %53 = vector.broadcast %c4_i32 : i32 to vector<16x128xi32>
    %54 = arith.cmpi sge, %1, %53 : vector<16x128xi32>
    %cst_41 = arith.constant 0.000000e+00 : f32
    %55 = vector.broadcast %cst_41 : f32 to vector<16x128xf32>
    %56 = arith.select %54, %52, %55 : vector<16x128xi1>, vector<16x128xf32>
    %c0_42 = arith.constant 0 : index
    %c0_43 = arith.constant 0 : index
    %c0_44 = arith.constant 0 : index
    %57 = vector.load %arg9[%c0_42, %c0_43, %c0_44] : memref<3x128x128xf32, #tpu.memory_space<vmem>>, vector<1x128x128xf32>
    %58 = vector.shape_cast %57 : vector<1x128x128xf32> to vector<128x128xf32>
    %cst_45 = arith.constant dense<0.000000e+00> : vector<16x128xf32>
    %59 = tpu.matmul %56, %58, %cst_45 {dimension_numbers = #tpu.dot_dimension_numbers<[1], [0], [0], [1], [0, 0, 1, 1], [], []>} : vector<16x128xf32>, vector<128x128xf32>, vector<16x128xf32> -> vector<16x128xf32>
    %60 = arith.addf %51, %59 : vector<16x128xf32>
    %c6_46 = arith.constant 6 : index
    %c0_47 = arith.constant 0 : index
    %61 = vector.load %arg20[%c6_46, %c0_47] : memref<24x128xf32, #tpu.memory_space<vmem>>, vector<16x128xf32>
    %c2_i32_48 = arith.constant 2 : i32
    %62 = vector.broadcast %c2_i32_48 : i32 to vector<16x128xi32>
    %63 = arith.cmpi sge, %1, %62 : vector<16x128xi32>
    %cst_49 = arith.constant 0.000000e+00 : f32
    %64 = vector.broadcast %cst_49 : f32 to vector<16x128xf32>
    %65 = arith.select %63, %61, %64 : vector<16x128xi1>, vector<16x128xf32>
    %c1_50 = arith.constant 1 : index
    %c0_51 = arith.constant 0 : index
    %c0_52 = arith.constant 0 : index
    %66 = vector.load %arg9[%c1_50, %c0_51, %c0_52] : memref<3x128x128xf32, #tpu.memory_space<vmem>>, vector<1x128x128xf32>
    %67 = vector.shape_cast %66 : vector<1x128x128xf32> to vector<128x128xf32>
    %cst_53 = arith.constant dense<0.000000e+00> : vector<16x128xf32>
    %68 = tpu.matmul %65, %67, %cst_53 {dimension_numbers = #tpu.dot_dimension_numbers<[1], [0], [0], [1], [0, 0, 1, 1], [], []>} : vector<16x128xf32>, vector<128x128xf32>, vector<16x128xf32> -> vector<16x128xf32>
    %69 = arith.addf %60, %68 : vector<16x128xf32>
    %c0_54 = arith.constant 0 : index
    %c0_55 = arith.constant 0 : index
    %70 = vector.load %arg10[%c0_54, %c0_55] : memref<1x128xf32, #tpu.memory_space<vmem>>, vector<1x128xf32>
    %71 = vector.broadcast %70 : vector<1x128xf32> to vector<16x128xf32>
    %72 = arith.addf %69, %71 : vector<16x128xf32>
    %cst_56 = arith.constant 0.000000e+00 : f32
    %73 = vector.broadcast %cst_56 : f32 to vector<16x128xf32>
    %74 = arith.maximumf %72, %73 : vector<16x128xf32>
    %c8_57 = arith.constant 8 : index
    %c0_58 = arith.constant 0 : index
    %75 = vector.load %arg20[%c8_57, %c0_58] : memref<24x128xf32, #tpu.memory_space<vmem>>, vector<16x128xf32>
    tpu.vector_store %arg20[%c8_57, %c0_58], %74 {strides = array<i32>} : memref<24x128xf32, #tpu.memory_space<vmem>>, vector<16x128xf32>,
    %c2_59 = arith.constant 2 : index
    %c0_60 = arith.constant 0 : index
    %c0_61 = arith.constant 0 : index
    %76 = vector.load %arg11[%c2_59, %c0_60, %c0_61] : memref<3x128x128xf32, #tpu.memory_space<vmem>>, vector<1x128x128xf32>
    %77 = vector.shape_cast %76 : vector<1x128x128xf32> to vector<128x128xf32>
    %cst_62 = arith.constant dense<0.000000e+00> : vector<16x128xf32>
    %78 = tpu.matmul %74, %77, %cst_62 {dimension_numbers = #tpu.dot_dimension_numbers<[1], [0], [0], [1], [0, 0, 1, 1], [], []>} : vector<16x128xf32>, vector<128x128xf32>, vector<16x128xf32> -> vector<16x128xf32>
    %c4_63 = arith.constant 4 : index
    %c0_64 = arith.constant 0 : index
    %79 = vector.load %arg20[%c4_63, %c0_64] : memref<24x128xf32, #tpu.memory_space<vmem>>, vector<16x128xf32>
    %c4_i32_65 = arith.constant 4 : i32
    %80 = vector.broadcast %c4_i32_65 : i32 to vector<16x128xi32>
    %81 = arith.cmpi sge, %1, %80 : vector<16x128xi32>
    %cst_66 = arith.constant 0.000000e+00 : f32
    %82 = vector.broadcast %cst_66 : f32 to vector<16x128xf32>
    %83 = arith.select %81, %79, %82 : vector<16x128xi1>, vector<16x128xf32>
    %c0_67 = arith.constant 0 : index
    %c0_68 = arith.constant 0 : index
    %c0_69 = arith.constant 0 : index
    %84 = vector.load %arg11[%c0_67, %c0_68, %c0_69] : memref<3x128x128xf32, #tpu.memory_space<vmem>>, vector<1x128x128xf32>
    %85 = vector.shape_cast %84 : vector<1x128x128xf32> to vector<128x128xf32>
    %cst_70 = arith.constant dense<0.000000e+00> : vector<16x128xf32>
    %86 = tpu.matmul %83, %85, %cst_70 {dimension_numbers = #tpu.dot_dimension_numbers<[1], [0], [0], [1], [0, 0, 1, 1], [], []>} : vector<16x128xf32>, vector<128x128xf32>, vector<16x128xf32> -> vector<16x128xf32>
    %87 = arith.addf %78, %86 : vector<16x128xf32>
    %c6_71 = arith.constant 6 : index
    %c0_72 = arith.constant 0 : index
    %88 = vector.load %arg20[%c6_71, %c0_72] : memref<24x128xf32, #tpu.memory_space<vmem>>, vector<16x128xf32>
    %c2_i32_73 = arith.constant 2 : i32
    %89 = vector.broadcast %c2_i32_73 : i32 to vector<16x128xi32>
    %90 = arith.cmpi sge, %1, %89 : vector<16x128xi32>
    %cst_74 = arith.constant 0.000000e+00 : f32
    %91 = vector.broadcast %cst_74 : f32 to vector<16x128xf32>
    %92 = arith.select %90, %88, %91 : vector<16x128xi1>, vector<16x128xf32>
    %c1_75 = arith.constant 1 : index
    %c0_76 = arith.constant 0 : index
    %c0_77 = arith.constant 0 : index
    %93 = vector.load %arg11[%c1_75, %c0_76, %c0_77] : memref<3x128x128xf32, #tpu.memory_space<vmem>>, vector<1x128x128xf32>
    %94 = vector.shape_cast %93 : vector<1x128x128xf32> to vector<128x128xf32>
    %cst_78 = arith.constant dense<0.000000e+00> : vector<16x128xf32>
    %95 = tpu.matmul %92, %94, %cst_78 {dimension_numbers = #tpu.dot_dimension_numbers<[1], [0], [0], [1], [0, 0, 1, 1], [], []>} : vector<16x128xf32>, vector<128x128xf32>, vector<16x128xf32> -> vector<16x128xf32>
    %96 = arith.addf %87, %95 : vector<16x128xf32>
    %c0_79 = arith.constant 0 : index
    %c0_80 = arith.constant 0 : index
    %97 = vector.load %arg12[%c0_79, %c0_80] : memref<1x128xf32, #tpu.memory_space<vmem>>, vector<1x128xf32>
    %98 = vector.broadcast %97 : vector<1x128xf32> to vector<16x128xf32>
    %99 = arith.addf %96, %98 : vector<16x128xf32>
    %cst_81 = arith.constant 0.000000e+00 : f32
    %100 = vector.broadcast %cst_81 : f32 to vector<16x128xf32>
    %101 = arith.maximumf %99, %100 : vector<16x128xf32>
    %102 = arith.addf %101, %47 : vector<16x128xf32>
    %cst_82 = arith.constant 0.000000e+00 : f32
    %103 = vector.broadcast %cst_82 : f32 to vector<16x128xf32>
    %104 = arith.maximumf %102, %103 : vector<16x128xf32>
    %c8_83 = arith.constant 8 : index
    %c0_84 = arith.constant 0 : index
    %105 = vector.load %arg20[%c8_83, %c0_84] : memref<24x128xf32, #tpu.memory_space<vmem>>, vector<16x128xf32>
    tpu.vector_store %arg20[%c8_83, %c0_84], %104 {strides = array<i32>} : memref<24x128xf32, #tpu.memory_space<vmem>>, vector<16x128xf32>,
    %c2_85 = arith.constant 2 : index
    %c0_86 = arith.constant 0 : index
    %c0_87 = arith.constant 0 : index
    %106 = vector.load %arg13[%c2_85, %c0_86, %c0_87] : memref<3x128x128xf32, #tpu.memory_space<vmem>>, vector<1x128x128xf32>
    %107 = vector.shape_cast %106 : vector<1x128x128xf32> to vector<128x128xf32>
    %cst_88 = arith.constant dense<0.000000e+00> : vector<16x128xf32>
    %108 = tpu.matmul %104, %107, %cst_88 {dimension_numbers = #tpu.dot_dimension_numbers<[1], [0], [0], [1], [0, 0, 1, 1], [], []>} : vector<16x128xf32>, vector<128x128xf32>, vector<16x128xf32> -> vector<16x128xf32>
    %c0_89 = arith.constant 0 : index
    %c0_90 = arith.constant 0 : index
    %109 = vector.load %arg20[%c0_89, %c0_90] : memref<24x128xf32, #tpu.memory_space<vmem>>, vector<16x128xf32>
    %c8_i32 = arith.constant 8 : i32
    %110 = vector.broadcast %c8_i32 : i32 to vector<16x128xi32>
    %111 = arith.cmpi sge, %1, %110 : vector<16x128xi32>
    %cst_91 = arith.constant 0.000000e+00 : f32
    %112 = vector.broadcast %cst_91 : f32 to vector<16x128xf32>
    %113 = arith.select %111, %109, %112 : vector<16x128xi1>, vector<16x128xf32>
    %c0_92 = arith.constant 0 : index
    %c0_93 = arith.constant 0 : index
    %c0_94 = arith.constant 0 : index
    %114 = vector.load %arg13[%c0_92, %c0_93, %c0_94] : memref<3x128x128xf32, #tpu.memory_space<vmem>>, vector<1x128x128xf32>
    %115 = vector.shape_cast %114 : vector<1x128x128xf32> to vector<128x128xf32>
    %cst_95 = arith.constant dense<0.000000e+00> : vector<16x128xf32>
    %116 = tpu.matmul %113, %115, %cst_95 {dimension_numbers = #tpu.dot_dimension_numbers<[1], [0], [0], [1], [0, 0, 1, 1], [], []>} : vector<16x128xf32>, vector<128x128xf32>, vector<16x128xf32> -> vector<16x128xf32>
    %117 = arith.addf %108, %116 : vector<16x128xf32>
    %c4_96 = arith.constant 4 : index
    %c0_97 = arith.constant 0 : index
    %118 = vector.load %arg20[%c4_96, %c0_97] : memref<24x128xf32, #tpu.memory_space<vmem>>, vector<16x128xf32>
    %c4_i32_98 = arith.constant 4 : i32
    %119 = vector.broadcast %c4_i32_98 : i32 to vector<16x128xi32>
    %120 = arith.cmpi sge, %1, %119 : vector<16x128xi32>
    %cst_99 = arith.constant 0.000000e+00 : f32
    %121 = vector.broadcast %cst_99 : f32 to vector<16x128xf32>
    %122 = arith.select %120, %118, %121 : vector<16x128xi1>, vector<16x128xf32>
    %c1_100 = arith.constant 1 : index
    %c0_101 = arith.constant 0 : index
    %c0_102 = arith.constant 0 : index
    %123 = vector.load %arg13[%c1_100, %c0_101, %c0_102] : memref<3x128x128xf32, #tpu.memory_space<vmem>>, vector<1x128x128xf32>
    %124 = vector.shape_cast %123 : vector<1x128x128xf32> to vector<128x128xf32>
    %cst_103 = arith.constant dense<0.000000e+00> : vector<16x128xf32>
    %125 = tpu.matmul %122, %124, %cst_103 {dimension_numbers = #tpu.dot_dimension_numbers<[1], [0], [0], [1], [0, 0, 1, 1], [], []>} : vector<16x128xf32>, vector<128x128xf32>, vector<16x128xf32> -> vector<16x128xf32>
    %126 = arith.addf %117, %125 : vector<16x128xf32>
    %c0_104 = arith.constant 0 : index
    %c0_105 = arith.constant 0 : index
    %127 = vector.load %arg14[%c0_104, %c0_105] : memref<1x128xf32, #tpu.memory_space<vmem>>, vector<1x128xf32>
    %128 = vector.broadcast %127 : vector<1x128xf32> to vector<16x128xf32>
    %129 = arith.addf %126, %128 : vector<16x128xf32>
    %cst_106 = arith.constant 0.000000e+00 : f32
    %130 = vector.broadcast %cst_106 : f32 to vector<16x128xf32>
    %131 = arith.maximumf %129, %130 : vector<16x128xf32>
    %c8_107 = arith.constant 8 : index
    %c0_108 = arith.constant 0 : index
    %132 = vector.load %arg20[%c8_107, %c0_108] : memref<24x128xf32, #tpu.memory_space<vmem>>, vector<16x128xf32>
    tpu.vector_store %arg20[%c8_107, %c0_108], %131 {strides = array<i32>} : memref<24x128xf32, #tpu.memory_space<vmem>>, vector<16x128xf32>,
    %c2_109 = arith.constant 2 : index
    %c0_110 = arith.constant 0 : index
    %c0_111 = arith.constant 0 : index
    %133 = vector.load %arg15[%c2_109, %c0_110, %c0_111] : memref<3x128x128xf32, #tpu.memory_space<vmem>>, vector<1x128x128xf32>
    %134 = vector.shape_cast %133 : vector<1x128x128xf32> to vector<128x128xf32>
    %cst_112 = arith.constant dense<0.000000e+00> : vector<16x128xf32>
    %135 = tpu.matmul %131, %134, %cst_112 {dimension_numbers = #tpu.dot_dimension_numbers<[1], [0], [0], [1], [0, 0, 1, 1], [], []>} : vector<16x128xf32>, vector<128x128xf32>, vector<16x128xf32> -> vector<16x128xf32>
    %c0_113 = arith.constant 0 : index
    %c0_114 = arith.constant 0 : index
    %136 = vector.load %arg20[%c0_113, %c0_114] : memref<24x128xf32, #tpu.memory_space<vmem>>, vector<16x128xf32>
    %c8_i32_115 = arith.constant 8 : i32
    %137 = vector.broadcast %c8_i32_115 : i32 to vector<16x128xi32>
    %138 = arith.cmpi sge, %1, %137 : vector<16x128xi32>
    %cst_116 = arith.constant 0.000000e+00 : f32
    %139 = vector.broadcast %cst_116 : f32 to vector<16x128xf32>
    %140 = arith.select %138, %136, %139 : vector<16x128xi1>, vector<16x128xf32>
    %c0_117 = arith.constant 0 : index
    %c0_118 = arith.constant 0 : index
    %c0_119 = arith.constant 0 : index
    %141 = vector.load %arg15[%c0_117, %c0_118, %c0_119] : memref<3x128x128xf32, #tpu.memory_space<vmem>>, vector<1x128x128xf32>
    %142 = vector.shape_cast %141 : vector<1x128x128xf32> to vector<128x128xf32>
    %cst_120 = arith.constant dense<0.000000e+00> : vector<16x128xf32>
    %143 = tpu.matmul %140, %142, %cst_120 {dimension_numbers = #tpu.dot_dimension_numbers<[1], [0], [0], [1], [0, 0, 1, 1], [], []>} : vector<16x128xf32>, vector<128x128xf32>, vector<16x128xf32> -> vector<16x128xf32>
    %144 = arith.addf %135, %143 : vector<16x128xf32>
    %c4_121 = arith.constant 4 : index
    %c0_122 = arith.constant 0 : index
    %145 = vector.load %arg20[%c4_121, %c0_122] : memref<24x128xf32, #tpu.memory_space<vmem>>, vector<16x128xf32>
    %c4_i32_123 = arith.constant 4 : i32
    %146 = vector.broadcast %c4_i32_123 : i32 to vector<16x128xi32>
    %147 = arith.cmpi sge, %1, %146 : vector<16x128xi32>
    %cst_124 = arith.constant 0.000000e+00 : f32
    %148 = vector.broadcast %cst_124 : f32 to vector<16x128xf32>
    %149 = arith.select %147, %145, %148 : vector<16x128xi1>, vector<16x128xf32>
    %c1_125 = arith.constant 1 : index
    %c0_126 = arith.constant 0 : index
    %c0_127 = arith.constant 0 : index
    %150 = vector.load %arg15[%c1_125, %c0_126, %c0_127] : memref<3x128x128xf32, #tpu.memory_space<vmem>>, vector<1x128x128xf32>
    %151 = vector.shape_cast %150 : vector<1x128x128xf32> to vector<128x128xf32>
    %cst_128 = arith.constant dense<0.000000e+00> : vector<16x128xf32>
    %152 = tpu.matmul %149, %151, %cst_128 {dimension_numbers = #tpu.dot_dimension_numbers<[1], [0], [0], [1], [0, 0, 1, 1], [], []>} : vector<16x128xf32>, vector<128x128xf32>, vector<16x128xf32> -> vector<16x128xf32>
    %153 = arith.addf %144, %152 : vector<16x128xf32>
    %c0_129 = arith.constant 0 : index
    %c0_130 = arith.constant 0 : index
    %154 = vector.load %arg16[%c0_129, %c0_130] : memref<1x128xf32, #tpu.memory_space<vmem>>, vector<1x128xf32>
    %155 = vector.broadcast %154 : vector<1x128xf32> to vector<16x128xf32>
    %156 = arith.addf %153, %155 : vector<16x128xf32>
    %cst_131 = arith.constant 0.000000e+00 : f32
    %157 = vector.broadcast %cst_131 : f32 to vector<16x128xf32>
    %158 = arith.maximumf %156, %157 : vector<16x128xf32>
    %159 = arith.addf %158, %104 : vector<16x128xf32>
    %cst_132 = arith.constant 0.000000e+00 : f32
    %160 = vector.broadcast %cst_132 : f32 to vector<16x128xf32>
    %161 = arith.maximumf %159, %160 : vector<16x128xf32>
    %c0_133 = arith.constant 0 : index
    %c0_134 = arith.constant 0 : index
    %162 = vector.load %arg2[%c0_133, %c0_134] : memref<1x128xi32, #tpu.memory_space<vmem>>, vector<1x128xi32>
    %163 = vector.shape_cast %161 : vector<16x128xf32> to vector<1x16x128xf32>
    %164 = vector.shape_cast %162 : vector<1x128xi32> to vector<1x1x128xi32>
    %165 = vector.broadcast %164 : vector<1x1x128xi32> to vector<1x16x128xi32>
    %166 = arith.cmpi slt, %0, %165 : vector<1x16x128xi32>
    %cst_135 = arith.constant 0.000000e+00 : f32
    %167 = vector.broadcast %cst_135 : f32 to vector<1x16x128xf32>
    %168 = arith.select %166, %163, %167 : vector<1x16x128xi1>, vector<1x16x128xf32>
    %cst_136 = arith.constant dense<0.000000e+00> : vector<1x128xf32>
    %169 = vector.multi_reduction <add>, %168, %cst_136 [1] : vector<1x16x128xf32> to vector<1x128xf32>
    %170 = arith.sitofp %162 : vector<1x128xi32> to vector<1x128xf32>
    %cst_137 = arith.constant 1.000000e+00 : f32
    %171 = vector.broadcast %cst_137 : f32 to vector<1x128xf32>
    %172 = arith.maximumf %170, %171 : vector<1x128xf32>
    %cst_138 = arith.constant 1.000000e+00 : f32
    %173 = vector.broadcast %cst_138 : f32 to vector<1x128xf32>
    %174 = arith.divf %173, %172 : vector<1x128xf32>
    %175 = arith.mulf %169, %174 : vector<1x128xf32>
    %c0_139 = arith.constant 0 : index
    %c0_140 = arith.constant 0 : index
    %176 = vector.load %arg17[%c0_139, %c0_140] : memref<128x128xf32, #tpu.memory_space<vmem>>, vector<128x128xf32>
    %cst_141 = arith.constant dense<0.000000e+00> : vector<1x128xf32>
    %177 = tpu.matmul %175, %176, %cst_141 {dimension_numbers = #tpu.dot_dimension_numbers<[1], [0], [0], [1], [0, 0, 1, 1], [], []>} : vector<1x128xf32>, vector<128x128xf32>, vector<1x128xf32> -> vector<1x128xf32>
    %c0_142 = arith.constant 0 : index
    %c0_143 = arith.constant 0 : index
    %178 = vector.load %arg18[%c0_142, %c0_143] : memref<1x128xf32, #tpu.memory_space<vmem>>, vector<1x128xf32>
    %179 = arith.addf %177, %178 : vector<1x128xf32>
    %c0_144 = arith.constant 0 : index
    %c0_145 = arith.constant 0 : index
    %180 = vector.load %arg19[%c0_144, %c0_145] : memref<1x128xf32, #tpu.memory_space<vmem>>, vector<1x128xf32>
    tpu.vector_store %arg19[%c0_144, %c0_145], %179 {strides = array<i32>} : memref<1x128xf32, #tpu.memory_space<vmem>>, vector<1x128xf32>,
    return
  }
  func.func @transform_0(%arg0: i32) -> (i32, i32, i32) {
    %c0_i32 = arith.constant 0 : i32
    %c0_i32_0 = arith.constant 0 : i32
    %c0_i32_1 = arith.constant 0 : i32
    return %arg0, %c0_i32, %c0_i32_0 : i32, i32, i32
  }
  func.func @transform_1(%arg0: i32) -> (i32, i32) {
    %c0_i32 = arith.constant 0 : i32
    %c0_i32_0 = arith.constant 0 : i32
    return %arg0, %c0_i32 : i32, i32
  }
  func.func @transform_2(%arg0: i32) -> (i32, i32) {
    %c0_i32 = arith.constant 0 : i32
    %c0_i32_0 = arith.constant 0 : i32
    %c0_i32_1 = arith.constant 0 : i32
    return %c0_i32, %c0_i32_0 : i32, i32
  }
  func.func @transform_3(%arg0: i32) -> (i32, i32) {
    %c0_i32 = arith.constant 0 : i32
    %c0_i32_0 = arith.constant 0 : i32
    %c0_i32_1 = arith.constant 0 : i32
    return %c0_i32, %c0_i32_0 : i32, i32
  }
  func.func @transform_4(%arg0: i32) -> (i32, i32, i32) {
    %c0_i32 = arith.constant 0 : i32
    %c0_i32_0 = arith.constant 0 : i32
    %c0_i32_1 = arith.constant 0 : i32
    %c0_i32_2 = arith.constant 0 : i32
    return %c0_i32, %c0_i32_0, %c0_i32_1 : i32, i32, i32
  }
  func.func @transform_5(%arg0: i32) -> (i32, i32) {
    %c0_i32 = arith.constant 0 : i32
    %c0_i32_0 = arith.constant 0 : i32
    %c0_i32_1 = arith.constant 0 : i32
    return %c0_i32, %c0_i32_0 : i32, i32
  }
  func.func @transform_6(%arg0: i32) -> (i32, i32) {
    %c0_i32 = arith.constant 0 : i32
    %c0_i32_0 = arith.constant 0 : i32
    %c0_i32_1 = arith.constant 0 : i32
    return %c0_i32, %c0_i32_0 : i32, i32
  }
  func.func @transform_7(%arg0: i32) -> (i32, i32) {
    %c0_i32 = arith.constant 0 : i32
    %c0_i32_0 = arith.constant 0 : i32
    %c0_i32_1 = arith.constant 0 : i32
    return %c0_i32, %c0_i32_0 : i32, i32
  }
  func.func @transform_8(%arg0: i32) -> (i32, i32, i32) {
    %c0_i32 = arith.constant 0 : i32
    %c0_i32_0 = arith.constant 0 : i32
    %c0_i32_1 = arith.constant 0 : i32
    %c0_i32_2 = arith.constant 0 : i32
    return %c0_i32, %c0_i32_0, %c0_i32_1 : i32, i32, i32
  }
  func.func @transform_9(%arg0: i32) -> (i32, i32) {
    %c0_i32 = arith.constant 0 : i32
    %c0_i32_0 = arith.constant 0 : i32
    %c0_i32_1 = arith.constant 0 : i32
    return %c0_i32, %c0_i32_0 : i32, i32
  }
  func.func @transform_10(%arg0: i32) -> (i32, i32, i32) {
    %c0_i32 = arith.constant 0 : i32
    %c0_i32_0 = arith.constant 0 : i32
    %c0_i32_1 = arith.constant 0 : i32
    %c0_i32_2 = arith.constant 0 : i32
    return %c0_i32, %c0_i32_0, %c0_i32_1 : i32, i32, i32
  }
  func.func @transform_11(%arg0: i32) -> (i32, i32) {
    %c0_i32 = arith.constant 0 : i32
    %c0_i32_0 = arith.constant 0 : i32
    %c0_i32_1 = arith.constant 0 : i32
    return %c0_i32, %c0_i32_0 : i32, i32
  }
  func.func @transform_12(%arg0: i32) -> (i32, i32, i32) {
    %c0_i32 = arith.constant 0 : i32
    %c0_i32_0 = arith.constant 0 : i32
    %c0_i32_1 = arith.constant 0 : i32
    %c0_i32_2 = arith.constant 0 : i32
    return %c0_i32, %c0_i32_0, %c0_i32_1 : i32, i32, i32
  }
  func.func @transform_13(%arg0: i32) -> (i32, i32) {
    %c0_i32 = arith.constant 0 : i32
    %c0_i32_0 = arith.constant 0 : i32
    %c0_i32_1 = arith.constant 0 : i32
    return %c0_i32, %c0_i32_0 : i32, i32
  }
  func.func @transform_14(%arg0: i32) -> (i32, i32, i32) {
    %c0_i32 = arith.constant 0 : i32
    %c0_i32_0 = arith.constant 0 : i32
    %c0_i32_1 = arith.constant 0 : i32
    %c0_i32_2 = arith.constant 0 : i32
    return %c0_i32, %c0_i32_0, %c0_i32_1 : i32, i32, i32
  }
  func.func @transform_15(%arg0: i32) -> (i32, i32) {
    %c0_i32 = arith.constant 0 : i32
    %c0_i32_0 = arith.constant 0 : i32
    %c0_i32_1 = arith.constant 0 : i32
    return %c0_i32, %c0_i32_0 : i32, i32
  }
  func.func @transform_16(%arg0: i32) -> (i32, i32) {
    %c0_i32 = arith.constant 0 : i32
    %c0_i32_0 = arith.constant 0 : i32
    %c0_i32_1 = arith.constant 0 : i32
    return %c0_i32, %c0_i32_0 : i32, i32
  }
  func.func @transform_17(%arg0: i32) -> (i32, i32) {
    %c0_i32 = arith.constant 0 : i32
    %c0_i32_0 = arith.constant 0 : i32
    %c0_i32_1 = arith.constant 0 : i32
    return %c0_i32, %c0_i32_0 : i32, i32
  }
  func.func @transform_18(%arg0: i32) -> (i32, i32) {
    %c0_i32 = arith.constant 0 : i32
    %c0_i32_0 = arith.constant 0 : i32
    return %arg0, %c0_i32 : i32, i32
  }
}

</mosaic_0001>

<bundles_post_ra>
// kernel: tpu_custom_call.1
= control target key start
LH: loop header
LB: loop body
LE: loop exit
PB: predicated region body
PF: predicated region fallthrough
CT: control target
= control target key end

     0   :  { %s1659_s0 = inlined_call_operand.hbm [shape: f32[1,16,24], index: 0, kind: input, shape index: {}]   ;;  %s1660_s1 = inlined_call_operand.hbm [shape: s32[1,128], index: 1, kind: input, shape index: {}]   ;;  %s1661_s2 = inlined_call_operand.hbm [shape: f32[24,128], index: 2, kind: input, shape index: {}]   ;;  %s1662_s3 = inlined_call_operand.vmem [shape: f32[1,128], index: 3, kind: input, shape index: {}]   ;;  %s1663_s4 = inlined_call_operand.hbm [shape: f32[3,128,128], index: 4, kind: input, shape index: {}]   ;;  %s1664_s5 = inlined_call_operand.vmem [shape: f32[1,128], index: 5, kind: input, shape index: {}]   ;;  %s1665_s6 = inlined_call_operand.hbm [shape: f32[24,128], index: 6, kind: input, shape index: {}]   ;;  %s1666_s7 = inlined_call_operand.vmem [shape: f32[1,128], index: 7, kind: input, shape index: {}]   ;;  %s1667_s8 = inlined_call_operand.hbm [shape: f32[3,128,128], index: 8, kind: input, shape index: {}]   ;;  %s1668_s9 = inlined_call_operand.vmem [shape: f32[1,128], index: 9, kind: input, shape index: {}]   ;;  %s1669_s10 = inlined_call_operand.hbm [shape: f32[3,128,128], index: 10, kind: input, shape index: {}]   ;;  %s1670_s11 = inlined_call_operand.vmem [shape: f32[1,128], index: 11, kind: input, shape index: {}]   ;;  %s1671_s12 = inlined_call_operand.hbm [shape: f32[3,128,128], index: 12, kind: input, shape index: {}]   ;;  %s1672_s13 = inlined_call_operand.vmem [shape: f32[1,128], index: 13, kind: input, shape index: {}]   ;;  %s1673_s14 = inlined_call_operand.hbm [shape: f32[3,128,128], index: 14, kind: input, shape index: {}]   ;;  %s1674_s15 = inlined_call_operand.vmem [shape: f32[1,128], index: 15, kind: input, shape index: {}]   ;;  %s1675_s16 = inlined_call_operand.hbm [shape: f32[128,128], index: 16, kind: input, shape index: {}]   ;;  %s1676_s17 = inlined_call_operand.vmem [shape: f32[1,128], index: 17, kind: input, shape index: {}]   ;;  %s1677_s18 = inlined_call_operand.hbm [shape: f32[1,128], index: 18, kind: output, shape index: {}]  }
   0x1   :  { %1678 = sst [smem:[#allocation28_spill]] %s1659_s0 }
   0x2   :  { %1679 = sst [smem:[#allocation29_spill]] %s1660_s1 }
   0x3   :  { %1680 = sst [smem:[#allocation30_spill]] %s1661_s2 }
   0x4   :  { %23 = vsyncpa [#allocation4], 0 }
   0x5   :  { %24 = vsyncpa [#allocation7], 0 }
   0x6   :  { %25 = vsyncpa [#allocation10], 0 }
   0x7   :  { %26 = vsyncpa [#allocation13], 0 }
   0x8   :  { %27 = vsyncpa [#allocation16], 0 }
   0x9   :  { %28 = vsyncpa [#allocation19], 0  ;;  %s1681_s29 = sld [smem:[#allocation29_spill]] }
   0xf   :  { %s48_s30 = sshll.u32 %s1681_s29, 4  ;;  %s49_s30 = int_to_ptr.hbm [resolvable:$true] %s48_s30 }
  0x10   :  { %29 = vsyncpa [#allocation5], 0  ;;  %s1409_s0 = smov [#allocation6]   ;;  %s73_s21 = sshll.u32 %s1663_s4, 4  ;;  %s74_s21 = int_to_ptr.hbm [resolvable:$true] %s73_s21 }
  0x11   :  { %s50_s19 = sshll.u32 %s1409_s0, 4  ;;  %s1410_s22 = smov [#allocation9]   ;;  %s51_s19 = int_to_ptr.vmem [resolvable:$true] %s50_s19 }
  0x12   :  { %53 = dma.hbm_to_vmem [thread:$0]  %s49_s30, 16, %s51_s19, [#allocation7]  }
  0x13   :  { %s75_s2 = sshll.u32 %s1410_s22, 4  ;;  %s103_s25 = sshll.u32 %s1667_s8, 4  ;;  %s76_s2 = int_to_ptr.vmem [resolvable:$true] %s75_s2  ;;  %s104_s25 = int_to_ptr.hbm [resolvable:$true] %s103_s25 }
  0x14   :  { %s1411_s26 = smov 128   ;;  %s1412_s27 = smov 8  }
  0x15   :  { %81 = dma.hbm_to_vmem [thread:$0]  %s74_s21, 6144, %s76_s2, [#allocation10], %s1411_s26, %s1411_s26, %s1412_s27  }
  0x16   :  { %s133_s30 = sshll.u32 %s1671_s12, 4  ;;  %s1413_s4 = smov [#allocation12]   ;;  %s134_s30 = int_to_ptr.hbm [resolvable:$true] %s133_s30 }
  0x17   :  { %s105_s0 = sshll.u32 %s1413_s4, 4  ;;  %s1414_s8 = smov [#allocation15]   ;;  %s106_s0 = int_to_ptr.vmem [resolvable:$true] %s105_s0 }
  0x18   :  { %111 = dma.hbm_to_vmem [thread:$0]  %s104_s25, 6144, %s106_s0, [#allocation13], %s1411_s26, %s1411_s26, %s1412_s27  }
  0x19   :  { %s135_s19 = sshll.u32 %s1414_s8, 4  ;;  %s1682_s22 = sld [smem:[#allocation28_spill]]  ;;  %s136_s19 = int_to_ptr.vmem [resolvable:$true] %s135_s19 }
  0x1a   :  { %141 = dma.hbm_to_vmem [thread:$0]  %s134_s30, 6144, %s136_s19, [#allocation16], %s1411_s26, %s1411_s26, %s1412_s27  }
  0x1b   :  { %s1683_s2 = sld [smem:[#allocation30_spill]]  ;;  %s1415_s28 = smov [#allocation3]  }
  0x1c   :  { %s36_s29 = sshll.u32 %s1415_s28, 4  ;;  %s1416_s25 = smov [#allocation8]   ;;  %s37_s29 = int_to_ptr.vmem [resolvable:$true] %s36_s29 }
  0x1d   :  { %s60_s4 = sshll.u32 %s1416_s25, 4  ;;  %s88_s1 = sshll.u32 %s1665_s6, 4  ;;  %s61_s4 = int_to_ptr.vmem [resolvable:$true] %s60_s4  ;;  %s89_s1 = int_to_ptr.hbm [resolvable:$true] %s88_s1 }
  0x1e   :  { %s118_s20 = sshll.u32 %s1669_s10, 4  ;;  %s148_s28 = sshll.u32 %s1673_s14, 4  ;;  %s119_s20 = int_to_ptr.hbm [resolvable:$true] %s118_s20  ;;  %s149_s28 = int_to_ptr.hbm [resolvable:$true] %s148_s28 }
  0x1f   :  { %s34_s23 = sshll.u32 %s1682_s22, 4  ;;  %s1417_s22 = smov [#allocation11]   ;;  %s35_s23 = int_to_ptr.hbm [resolvable:$true] %s34_s23 }
  0x20   :  { %42 = dma.hbm_to_vmem [thread:$0]  %s35_s23, 256, %s37_s29, [#allocation4], %s1411_s26, %s1411_s26, %s1412_s27  }
  0x21   :  { %s58_s24 = sshll.u32 %s1683_s2, 4  ;;  %s90_s12 = sshll.u32 %s1417_s22, 4  ;;  %s59_s24 = int_to_ptr.hbm [resolvable:$true] %s58_s24  ;;  %s91_s12 = int_to_ptr.vmem [resolvable:$true] %s90_s12 }
  0x22   :  { %66 = dma.hbm_to_vmem [thread:$0]  %s59_s24, 384, %s61_s4, [#allocation7], %s1411_s26, %s1411_s26, %s1412_s27  }
  0x23   :  { %96 = dma.hbm_to_vmem [thread:$0]  %s89_s1, 384, %s91_s12, [#allocation10], %s1411_s26, %s1411_s26, %s1412_s27  }
  0x24   :  { %s1418_s23 = smov [#allocation14]   ;;  %s163_s29 = sshll.u32 %s1675_s16, 4  ;;  %s164_s29 = int_to_ptr.hbm [resolvable:$true] %s163_s29 }
  0x25   :  { %s120_s6 = sshll.u32 %s1418_s23, 4  ;;  %s1419_s25 = smov [#allocation17]   ;;  %s121_s6 = int_to_ptr.vmem [resolvable:$true] %s120_s6 }
  0x26   :  { %126 = dma.hbm_to_vmem [thread:$0]  %s119_s20, 6144, %s121_s6, [#allocation13], %s1411_s26, %s1411_s26, %s1412_s27  }
  0x27   :  { %s150_s4 = sshll.u32 %s1419_s25, 4  ;;  %s1420_s0 = smov [#allocation18]   ;;  %s151_s4 = int_to_ptr.vmem [resolvable:$true] %s150_s4 }
  0x28   :  { %156 = dma.hbm_to_vmem [thread:$0]  %s149_s28, 6144, %s151_s4, [#allocation16], %s1411_s26, %s1411_s26, %s1412_s27  }
  0x29   :  { %s165_s14 = sshll.u32 %s1420_s0, 4  ;;  %s166_s14 = int_to_ptr.vmem [resolvable:$true] %s165_s14 }
  0x2a   :  { %171 = dma.hbm_to_vmem [thread:$0]  %s164_s29, 2048, %s166_s14, [#allocation19], %s1411_s26, %s1411_s26, %s1412_s27  }
  0x2b   :  { %1395 = dma.done.wait [#allocation4], 256  }
  0x2c   :  { %1396 = vsyncadd [#allocation4], 4294967040 }
  0x2d   :  { %1397 = dma.done.wait [#allocation7], 400  }
  0x2e   :  { %1398 = vsyncadd [#allocation7], 4294966896 }
  0x2f   :  { %1399 = dma.done.wait [#allocation10], 6528  }
  0x30   :  { %1400 = vsyncadd [#allocation10], 4294960768 }
  0x31   :  { %1401 = dma.done.wait [#allocation13], 12288  }
  0x32   :  { %1402 = vsyncadd [#allocation13], 4294955008 }
  0x33   :  { %1403 = dma.done.wait [#allocation16], 12288  }
  0x34   :  { %1404 = vsyncadd [#allocation16], 4294955008 }
  0x35   :  { %1405 = dma.done.wait [#allocation19], 2048  }
  0x36   :  { %1406 = vsyncadd [#allocation19], 4294965248  ;;  %v222_v0 = vld [vmem:[#allocation8 + $0x10] sm:$0xff]  ;;  %v221_v1 = vld [vmem:[#allocation8 + $0x8] sm:$0xff]  ;;  %vm227_vm0 = vcmask 195584   ;;  %v1421_v47 = vmov 0.0  }
  0x37   :  { %247 = vmatpush.msra.mxu1 %v222_v0  ;;  %v277_v2 = vld [vmem:[#allocation9 + $0x178] sm:$0xff]  ;;  %v220_v3 = vld [vmem:[#allocation8] sm:$0xff]  ;;  %v276_v4 = vld [vmem:[#allocation9 + $0x170] sm:$0xff]  ;;  %217 = vst [vmem:[#allocation2] sm:$0xff] %v1421_v47  ;;  %s1422_s12 = smov [#allocation20]   ;;  %s1080_s2 = sshll.u32 %s1677_s18, 4  ;;  %s1081_s2 = int_to_ptr.hbm [resolvable:$true] %s1080_s2 }
  0x38   :  { %323 = vmatpush.msra.mxu2 %v277_v2  ;;  %v1575_v5 = vld [vmem:[#allocation3] sm:$0xff]  ;;  %v275_v6 = vld [vmem:[#allocation9 + $0x168] sm:$0xff]  ;;  %v274_v10 = vld [vmem:[#allocation9 + $0x160] sm:$0xff]  ;;  %s1078_s23 = sshll.u32 %s1422_s12, 4  ;;  %s1079_s23 = int_to_ptr.vmem [resolvable:$true] %s1078_s23 }
  0x39   :  { %248 = vmatpush.msra.mxu1 %v221_v1  ;;  %v368_v7 = vld [vmem:[#allocation9 + $0xf8] sm:$0xff]  ;;  %v367_v9 = vld [vmem:[#allocation9 + $0xf0] sm:$0xff]  ;;  %v366_v12 = vld [vmem:[#allocation9 + $0xe8] sm:$0xff] }
  0x3a   :  { %324 = vmatpush.msra.mxu2 %v276_v4  ;;  %v299_v8 = vld [vmem:[#allocation9 + $0x78] sm:$0xff]  ;;  %369 = vmatpush.msra.mxu3 %v368_v7  ;;  %v298_v11 = vld [vmem:[#allocation9 + $0x70] sm:$0xff]  ;;  %v297_v14 = vld [vmem:[#allocation9 + $0x68] sm:$0xff] }
  0x3b   :  { %249 = vmatpush.msra.mxu1 %v220_v3  ;;  %v273_v13 = vld [vmem:[#allocation9 + $0x158] sm:$0xff]  ;;  %v365_v15 = vld [vmem:[#allocation9 + $0xe0] sm:$0xff]  ;;  %v272_v16 = vld [vmem:[#allocation9 + $0x150] sm:$0xff] }
  0x3c   :  { %1095 = vmatmul.msk.f32.vlgmr.msra.gmra.mxu1 %vm227_vm0, %v1575_v5  ;;  %325 = vmatpush.msra.mxu2 %v275_v6  ;;  %v1579_v17 = vld [vmem:[#allocation3 + $0x8] sm:$0xff]  ;;  %v271_v20 = vld [vmem:[#allocation9 + $0x148] sm:$0xff]  ;;  %v294_v23 = vld [vmem:[#allocation9 + $0x50] sm:$0xff]  ;;  %v214_v6 = vlaneseq }
  0x3d   :  { %300 = vmatpush.msrb.mxu1 %v299_v8  ;;  %370 = vmatpush.msra.mxu3 %v367_v9  ;;  %v296_v18 = vld [vmem:[#allocation9 + $0x60] sm:$0xff]  ;;  %v364_v19 = vld [vmem:[#allocation9 + $0xd8] sm:$0xff]  ;;  %v363_v24 = vld [vmem:[#allocation9 + $0xd0] sm:$0xff] }
  0x3e   :  { %326 = vmatpush.msra.mxu2 %v274_v10  ;;  %v270_v21 = vld [vmem:[#allocation9 + $0x140] sm:$0xff]  ;;  %v295_v22 = vld [vmem:[#allocation9 + $0x58] sm:$0xff]  ;;  %v362_v25 = vld [vmem:[#allocation9 + $0xc8] sm:$0xff]  ;;  %v1591_v8 = vshrl.u32 %v214_v6, 7 }
  0x3f   :  { %301 = vmatpush.msrb.mxu1 %v298_v11  ;;  %371 = vmatpush.msra.mxu3 %v366_v12  ;;  %v269_v26 = vld [vmem:[#allocation9 + $0x138] sm:$0xff]  ;;  %v293_v27 = vld [vmem:[#allocation9 + $0x48] sm:$0xff]  ;;  %v361_v28 = vld [vmem:[#allocation9 + $0xc0] sm:$0xff] }
  0x40   :  { %327 = vmatpush.msra.mxu2 %v273_v13  ;;  %v268_v29 = vld [vmem:[#allocation9 + $0x130] sm:$0xff]  ;;  %v292_v30 = vld [vmem:[#allocation9 + $0x40] sm:$0xff]  ;;  %v360_v31 = vld [vmem:[#allocation9 + $0xb8] sm:$0xff]  ;;  %vm280_vm1 = vcmp.ge.s32.totalorder %v1591_v8, 2  ;;  %vm348_vm2 = vcmp.ge.s32.totalorder %v1591_v8, 1  ;;  %vm457_vm3 = vcmp.ge.s32.totalorder %v1591_v8, 4 }
  0x41   :  { %302 = vmatpush.msrb.mxu1 %v297_v14  ;;  %372 = vmatpush.msra.mxu3 %v365_v15  ;;  %v267_v32 = vld [vmem:[#allocation9 + $0x128] sm:$0xff]  ;;  %v291_v33 = vld [vmem:[#allocation9 + $0x38] sm:$0xff]  ;;  %v266_v34 = vld [vmem:[#allocation9 + $0x120] sm:$0xff] }
  0x42   :  { %328 = vmatpush.msra.mxu2 %v272_v16  ;;  %v265_v35 = vld [vmem:[#allocation9 + $0x118] sm:$0xff]  ;;  %v290_v36 = vld [vmem:[#allocation9 + $0x30] sm:$0xff]  ;;  %v289_v39 = vld [vmem:[#allocation9 + $0x28] sm:$0xff] }
  0x43   :  { %303 = vmatpush.msrb.mxu1 %v296_v18  ;;  %373 = vmatpush.msra.mxu3 %v364_v19  ;;  %v264_v37 = vld [vmem:[#allocation9 + $0x110] sm:$0xff]  ;;  %v263_v40 = vld [vmem:[#allocation9 + $0x108] sm:$0xff]  ;;  %v288_v42 = vld [vmem:[#allocation9 + $0x20] sm:$0xff] }
  0x44   :  { %1096 = vmatmul.msk.f32.gmra.mxu1 %vm227_vm0, %v1579_v17  ;;  %329 = vmatpush.msra.mxu2 %v271_v20  ;;  %v359_v38 = vld [vmem:[#allocation9 + $0xb0] sm:$0xff]  ;;  %v358_v41 = vld [vmem:[#allocation9 + $0xa8] sm:$0xff]  ;;  %v262_v43 = vld [vmem:[#allocation9 + $0x100] sm:$0xff] }
  0x45   :  { %304 = vmatpush.msrb.mxu1 %v295_v22  ;;  %374 = vmatpush.msra.mxu3 %v363_v24  ;;  %v357_v44 = vld [vmem:[#allocation9 + $0xa0] sm:$0xff]  ;;  %v287_v45 = vld [vmem:[#allocation9 + $0x18] sm:$0xff]  ;;  %v286_v48 = vld [vmem:[#allocation9 + $0x10] sm:$0xff] }
  0x46   :  { %330 = vmatpush.msra.mxu2 %v270_v21  ;;  %v356_v46 = vld [vmem:[#allocation9 + $0x98] sm:$0xff]  ;;  %v355_v49 = vld [vmem:[#allocation9 + $0x90] sm:$0xff]  ;;  %v285_v50 = vld [vmem:[#allocation9 + $0x8] sm:$0xff] }
  0x47   :  { %305 = vmatpush.msrb.mxu1 %v294_v23  ;;  %375 = vmatpush.msra.mxu3 %v362_v25  ;;  %v354_v51 = vld [vmem:[#allocation9 + $0x88] sm:$0xff]  ;;  %v284_v52 = vld [vmem:[#allocation9] sm:$0xff]  ;;  %v404_v54 = vld [vmem:[#allocation11 + $0x10] sm:$0xff] }
  0x48   :  { %331 = vmatpush.msra.mxu2 %v269_v26  ;;  %v353_v53 = vld [vmem:[#allocation9 + $0x80] sm:$0xff]  ;;  %v403_v55 = vld [vmem:[#allocation11 + $0x8] sm:$0xff]  ;;  %422 = vmatpush.msra.mxu0 %v404_v54  ;;  %v454_v57 = vld [vmem:[#allocation12 + $0x178] sm:$0xff] }
  0x49   :  { %306 = vmatpush.msrb.mxu1 %v293_v27  ;;  %376 = vmatpush.msra.mxu3 %v361_v28  ;;  %v402_v56 = vld [vmem:[#allocation11] sm:$0xff]  ;;  %v453_v58 = vld [vmem:[#allocation12 + $0x170] sm:$0xff]  ;;  %v476_v59 = vld [vmem:[#allocation12 + $0x78] sm:$0xff] }
  0x4a   :  { %332 = vmatpush.msra.mxu2 %v268_v29  ;;  %423 = vmatpush.msra.mxu0 %v403_v55  ;;  %v452_v60 = vld [vmem:[#allocation12 + $0x168] sm:$0xff]  ;;  %v543_v61 = vld [vmem:[#allocation12 + $0xf8] sm:$0xff]  ;;  %v475_v62 = vld [vmem:[#allocation12 + $0x70] sm:$0xff] }
  0x4b   :  { %307 = vmatpush.msrb.mxu1 %v292_v30  ;;  %377 = vmatpush.msra.mxu3 %v360_v31  ;;  %v542_v63 = vld [vmem:[#allocation12 + $0xf0] sm:$0xff]  ;;  %v451_v0 = vld [vmem:[#allocation12 + $0x160] sm:$0xff]  ;;  %v450_v1 = vld [vmem:[#allocation12 + $0x158] sm:$0xff] }
  0x4c   :  { %333 = vmatpush.msra.mxu2 %v267_v32  ;;  %424 = vmatpush.msra.mxu0 %v402_v56  ;;  %v1121_v2 = vld [vmem:[%s1662_s3] ss:$0 sm:$0xff]  ;;  %v449_v3 = vld [vmem:[#allocation12 + $0x150] sm:$0xff]  ;;  %v474_v16 = vld [vmem:[#allocation12 + $0x68] sm:$0xff] }
  0x4d   :  { %308 = vmatpush.msrb.mxu1 %v291_v33  ;;  %378 = vmatpush.msra.mxu3 %v359_v38  ;;  %v541_v18 = vld [vmem:[#allocation12 + $0xe8] sm:$0xff]  ;;  %v473_v19 = vld [vmem:[#allocation12 + $0x60] sm:$0xff]  ;;  %v472_v22 = vld [vmem:[#allocation12 + $0x58] sm:$0xff] }
  0x4e   :  { %334 = vmatpush.msra.mxu2 %v266_v34  ;;  %1099 = vmatmul.msk.f32.vlgmr.msra.gmra.mxu0 %vm227_vm0, %v1575_v5  ;;  %v447_v20 = vld [vmem:[#allocation12 + $0x140] sm:$0xff]  ;;  %v446_v23 = vld [vmem:[#allocation12 + $0x138] sm:$0xff]  ;;  %v471_v25 = vld [vmem:[#allocation12 + $0x50] sm:$0xff] }
  0x4f   :  { %309 = vmatpush.msrb.mxu1 %v290_v36  ;;  %379 = vmatpush.msra.mxu3 %v358_v41  ;;  %v540_v21 = vld [vmem:[#allocation12 + $0xe0] sm:$0xff]  ;;  %v539_v24 = vld [vmem:[#allocation12 + $0xd8] sm:$0xff]  ;;  %v445_v26 = vld [vmem:[#allocation12 + $0x130] sm:$0xff] }
  0x50   :  { %335 = vmatpush.msra.mxu2 %v265_v35  ;;  %477 = vmatpush.msrb.mxu0 %v476_v59  ;;  %v538_v27 = vld [vmem:[#allocation12 + $0xd0] sm:$0xff]  ;;  %v470_v28 = vld [vmem:[#allocation12 + $0x48] sm:$0xff]  ;;  %v469_v31 = vld [vmem:[#allocation12 + $0x40] sm:$0xff] }
  0x51   :  { %310 = vmatpush.msrb.mxu1 %v289_v39  ;;  %380 = vmatpush.msra.mxu3 %v357_v44  ;;  %v444_v29 = vld [vmem:[#allocation12 + $0x128] sm:$0xff]  ;;  %v443_v32 = vld [vmem:[#allocation12 + $0x120] sm:$0xff]  ;;  %v468_v34 = vld [vmem:[#allocation12 + $0x38] sm:$0xff] }
  0x52   :  { %336 = vmatpush.msra.mxu2 %v264_v37  ;;  %478 = vmatpush.msrb.mxu0 %v475_v62  ;;  %v537_v30 = vld [vmem:[#allocation12 + $0xc8] sm:$0xff]  ;;  %v536_v33 = vld [vmem:[#allocation12 + $0xc0] sm:$0xff]  ;;  %v442_v35 = vld [vmem:[#allocation12 + $0x118] sm:$0xff] }
  0x53   :  { %311 = vmatpush.msrb.mxu1 %v288_v42  ;;  %381 = vmatpush.msra.mxu3 %v356_v46  ;;  %v535_v36 = vld [vmem:[#allocation12 + $0xb8] sm:$0xff]  ;;  %v467_v37 = vld [vmem:[#allocation12 + $0x30] sm:$0xff]  ;;  %v440_v41 = vld [vmem:[#allocation12 + $0x108] sm:$0xff] }
  0x54   :  { %337 = vmatpush.msra.mxu2 %v263_v40  ;;  %479 = vmatpush.msrb.mxu0 %v474_v16  ;;  %v441_v38 = vld [vmem:[#allocation12 + $0x110] sm:$0xff]  ;;  %v466_v40 = vld [vmem:[#allocation12 + $0x28] sm:$0xff]  ;;  %v439_v44 = vld [vmem:[#allocation12 + $0x100] sm:$0xff] }
  0x55   :  { %312 = vmatpush.msrb.mxu1 %v287_v45  ;;  %382 = vmatpush.msra.mxu3 %v355_v49  ;;  %v534_v39 = vld [vmem:[#allocation12 + $0xb0] sm:$0xff]  ;;  %v533_v42 = vld [vmem:[#allocation12 + $0xa8] sm:$0xff]  ;;  %v532_v45 = vld [vmem:[#allocation12 + $0xa0] sm:$0xff] }
  0x56   :  { %338 = vmatpush.msra.mxu2 %v262_v43  ;;  %1100 = vmatmul.msk.f32.gmra.mxu0 %vm227_vm0, %v1579_v17  ;;  %v448_v17 = vld [vmem:[#allocation12 + $0x148] sm:$0xff]  ;;  %v465_v43 = vld [vmem:[#allocation12 + $0x20] sm:$0xff]  ;;  %v464_v46 = vld [vmem:[#allocation12 + $0x18] sm:$0xff] }
  0x57   :  { %313 = vmatpush.msrb.mxu1 %v286_v48  ;;  %383 = vmatpush.msra.mxu3 %v354_v51  ;;  %v531_v48 = vld [vmem:[#allocation12 + $0x98] sm:$0xff]  ;;  %v463_v49 = vld [vmem:[#allocation12 + $0x10] sm:$0xff]  ;;  %v462_v51 = vld [vmem:[#allocation12 + $0x8] sm:$0xff] }
  0x58   :  { %544 = vmatpush.msrb.mxu2 %v543_v61  ;;  %480 = vmatpush.msrb.mxu0 %v473_v19  ;;  %v528_v54 = vld [vmem:[#allocation12 + $0x80] sm:$0xff]  ;;  %v615_v59 = vld [vmem:[#allocation14 + $0x78] sm:$0xff]  ;;  %v593_v61 = vld [vmem:[#allocation14 + $0x168] sm:$0xff] }
  0x59   :  { %314 = vmatpush.msrb.mxu1 %v285_v50  ;;  %384 = vmatpush.msra.mxu3 %v353_v53  ;;  %v530_v50 = vld [vmem:[#allocation12 + $0x90] sm:$0xff]  ;;  %v461_v53 = vld [vmem:[#allocation12] sm:$0xff]  ;;  %v682_v62 = vld [vmem:[#allocation14 + $0xf8] sm:$0xff] }
  0x5a   :  { %545 = vmatpush.msrb.mxu2 %v542_v63  ;;  %481 = vmatpush.msrb.mxu0 %v472_v22 }
  0x5b   :  { %315 = vmatpush.msrb.mxu1 %v284_v52  ;;  %v529_v52 = vld [vmem:[#allocation12 + $0x88] sm:$0xff]  ;;  %616 = vmatpush.msrb.mxu3 %v615_v59  ;;  %v580_v59 = vld [vmem:[#allocation14 + $0x100] sm:$0xff] }
  0x5c   :  { %546 = vmatpush.msrb.mxu2 %v541_v18  ;;  %482 = vmatpush.msrb.mxu0 %v471_v25 }
  0x5d   :  { %500 = vmatpush.msra.mxu1 %v454_v57  ;;  %v595_v57 = vld [vmem:[#allocation14 + $0x178] sm:$0xff] }
  0x5e   :  { %547 = vmatpush.msrb.mxu2 %v540_v21  ;;  %483 = vmatpush.msrb.mxu0 %v470_v28  ;;  %v590_v28 = vld [vmem:[#allocation14 + $0x150] sm:$0xff] }
  0x5f   :  { %501 = vmatpush.msra.mxu1 %v453_v58  ;;  %v594_v58 = vld [vmem:[#allocation14 + $0x170] sm:$0xff] }
  0x60   :  { %548 = vmatpush.msrb.mxu2 %v539_v24  ;;  %484 = vmatpush.msrb.mxu0 %v469_v31  ;;  %v589_v31 = vld [vmem:[#allocation14 + $0x148] sm:$0xff] }
  0x61   :  { %502 = vmatpush.msra.mxu1 %v452_v60 }
  0x62   :  { %549 = vmatpush.msrb.mxu2 %v538_v27  ;;  %485 = vmatpush.msrb.mxu0 %v468_v34  ;;  %v614_v27 = vld [vmem:[#allocation14 + $0x70] sm:$0xff]  ;;  %v588_v34 = vld [vmem:[#allocation14 + $0x140] sm:$0xff] }
  0x63   :  { %503 = vmatpush.msra.mxu1 %v451_v0  ;;  %v1122_v0 = vld [vmem:[%s1664_s5] ss:$0 sm:$0xff]  ;;  %617 = vmatpush.msrb.mxu3 %v614_v27 }
  0x64   :  { %550 = vmatpush.msrb.mxu2 %v537_v30  ;;  %486 = vmatpush.msrb.mxu0 %v467_v37  ;;  %v613_v30 = vld [vmem:[#allocation14 + $0x68] sm:$0xff]  ;;  %v587_v37 = vld [vmem:[#allocation14 + $0x138] sm:$0xff] }
  0x65   :  { %504 = vmatpush.msra.mxu1 %v450_v1  ;;  %v1123_v1 = vld [vmem:[%s1666_s7] ss:$0 sm:$0xff]  ;;  %618 = vmatpush.msrb.mxu3 %v613_v30 }
  0x66   :  { %551 = vmatpush.msrb.mxu2 %v536_v33  ;;  %487 = vmatpush.msrb.mxu0 %v466_v40  ;;  %v612_v33 = vld [vmem:[#allocation14 + $0x60] sm:$0xff]  ;;  %v586_v40 = vld [vmem:[#allocation14 + $0x130] sm:$0xff] }
  0x67   :  { %505 = vmatpush.msra.mxu1 %v449_v3  ;;  %v592_v3 = vld [vmem:[#allocation14 + $0x160] sm:$0xff]  ;;  %619 = vmatpush.msrb.mxu3 %v612_v33  ;;  %v756_v33 = vld [vmem:[#allocation15 + $0x58] sm:$0xff] }
  0x68   :  { %552 = vmatpush.msrb.mxu2 %v535_v36  ;;  %488 = vmatpush.msrb.mxu0 %v465_v43  ;;  %v611_v36 = vld [vmem:[#allocation14 + $0x58] sm:$0xff]  ;;  %v585_v43 = vld [vmem:[#allocation14 + $0x128] sm:$0xff] }
  0x69   :  { %506 = vmatpush.msra.mxu1 %v448_v17  ;;  %620 = vmatpush.msrb.mxu3 %v611_v36  ;;  %v735_v36 = vld [vmem:[#allocation15 + $0x160] sm:$0xff] }
  0x6a   :  { %553 = vmatpush.msrb.mxu2 %v534_v39  ;;  %489 = vmatpush.msrb.mxu0 %v464_v46  ;;  %v610_v39 = vld [vmem:[#allocation14 + $0x50] sm:$0xff]  ;;  %v584_v46 = vld [vmem:[#allocation14 + $0x120] sm:$0xff] }
  0x6b   :  { %507 = vmatpush.msra.mxu1 %v447_v20  ;;  %621 = vmatpush.msrb.mxu3 %v610_v39  ;;  %v734_v39 = vld [vmem:[#allocation15 + $0x158] sm:$0xff] }
  0x6c   :  { %554 = vmatpush.msrb.mxu2 %v533_v42  ;;  %490 = vmatpush.msrb.mxu0 %v463_v49  ;;  %v609_v42 = vld [vmem:[#allocation14 + $0x48] sm:$0xff]  ;;  %v607_v49 = vld [vmem:[#allocation14 + $0x38] sm:$0xff] }
  0x6d   :  { %508 = vmatpush.msra.mxu1 %v446_v23  ;;  %622 = vmatpush.msrb.mxu3 %v609_v42  ;;  %v733_v42 = vld [vmem:[#allocation15 + $0x150] sm:$0xff] }
  0x6e   :  { %555 = vmatpush.msrb.mxu2 %v532_v45  ;;  %491 = vmatpush.msrb.mxu0 %v462_v51  ;;  %v608_v45 = vld [vmem:[#allocation14 + $0x40] sm:$0xff]  ;;  %v674_v51 = vld [vmem:[#allocation14 + $0xb8] sm:$0xff] }
  0x6f   :  { %509 = vmatpush.msra.mxu1 %v445_v26  ;;  %623 = vmatpush.msrb.mxu3 %v608_v45  ;;  %v732_v45 = vld [vmem:[#allocation15 + $0x148] sm:$0xff] }
  0x70   :  { %556 = vmatpush.msrb.mxu2 %v531_v48  ;;  %492 = vmatpush.msrb.mxu0 %v461_v53  ;;  %v675_v48 = vld [vmem:[#allocation14 + $0xc0] sm:$0xff]  ;;  %v582_v53 = vld [vmem:[#allocation14 + $0x110] sm:$0xff] }
  0x71   :  { %510 = vmatpush.msra.mxu1 %v444_v29  ;;  %v681_v29 = vld [vmem:[#allocation14 + $0xf0] sm:$0xff]  ;;  %624 = vmatpush.msrb.mxu3 %v607_v49  ;;  %v824_v49 = vld [vmem:[#allocation15 + $0xe0] sm:$0xff] }
  0x72   :  { %557 = vmatpush.msrb.mxu2 %v530_v50  ;;  %639 = vmatpush.msra.mxu0 %v595_v57  ;;  %v583_v50 = vld [vmem:[#allocation14 + $0x118] sm:$0xff]  ;;  %v672_v57 = vld [vmem:[#allocation14 + $0xa8] sm:$0xff] }
  0x73   :  { %511 = vmatpush.msra.mxu1 %v443_v32  ;;  %v680_v32 = vld [vmem:[#allocation14 + $0xe8] sm:$0xff] }
  0x74   :  { %558 = vmatpush.msrb.mxu2 %v529_v52  ;;  %640 = vmatpush.msra.mxu0 %v594_v58  ;;  %v606_v52 = vld [vmem:[#allocation14 + $0x30] sm:$0xff]  ;;  %v604_v58 = vld [vmem:[#allocation14 + $0x20] sm:$0xff] }
  0x75   :  { %512 = vmatpush.msra.mxu1 %v442_v35  ;;  %v679_v35 = vld [vmem:[#allocation14 + $0xe0] sm:$0xff]  ;;  %625 = vmatpush.msrb.mxu3 %v606_v52  ;;  %v823_v52 = vld [vmem:[#allocation15 + $0xd8] sm:$0xff] }
  0x76   :  { %559 = vmatpush.msrb.mxu2 %v528_v54  ;;  %641 = vmatpush.msra.mxu0 %v593_v61  ;;  %v673_v54 = vld [vmem:[#allocation14 + $0xb0] sm:$0xff]  ;;  %v603_v61 = vld [vmem:[#allocation14 + $0x18] sm:$0xff] }
  0x77   :  { %513 = vmatpush.msra.mxu1 %v441_v38  ;;  %v678_v38 = vld [vmem:[#allocation14 + $0xd8] sm:$0xff] }
  0x78   :  { %642 = vmatpush.msra.mxu0 %v592_v3  ;;  %v600_v3 = vld [vmem:[#allocation14] sm:$0xff] }
  0x79   :  { %514 = vmatpush.msra.mxu1 %v440_v41  ;;  %v677_v41 = vld [vmem:[#allocation14 + $0xd0] sm:$0xff] }
  0x7b   :  { %515 = vmatpush.msra.mxu1 %v439_v44  ;;  %v676_v44 = vld [vmem:[#allocation14 + $0xc8] sm:$0xff] }
  0xb9   :  { %v251_v4 = vpop.f32.mrf.mxu1 }
  0xba   :  { %v252_v5 = vadd.f32 %v1121_v2, %v251_v4 }
  0xbc   :  { %v257_v7 = vmax.f32 %v252_v5, 0.0  ;;  %v591_v5 = vld [vmem:[#allocation14 + $0x158] sm:$0xff] }
  0xbd   :  { %643 = vmatpush.msra.mxu0 %v591_v5  ;;  %v760_v5 = vld [vmem:[#allocation15 + $0x78] sm:$0xff] }
  0xbe   :  { %259 = vst [vmem:[#allocation2 + $0x8] sm:$0xff] %v257_v7  ;;  %339 = vmatmul.f32.vlgmr.msra.gmra.mxu2 %v257_v7 }
  0xbf   :  { %644 = vmatpush.msra.mxu0 %v590_v28  ;;  %761 = vmatpush.msra.mxu2 %v760_v5  ;;  %v817_v5 = vld [vmem:[#allocation15 + $0xa8] sm:$0xff] }
  0xc1   :  { %v254_v9 = vpop.f32.mrf.mxu1  ;;  %645 = vmatpush.msra.mxu0 %v589_v31  ;;  %v758_v31 = vld [vmem:[#allocation15 + $0x68] sm:$0xff] }
  0xc2   :  { %v255_v10 = vadd.f32 %v1121_v2, %v254_v9 }
  0xc3   :  { %646 = vmatpush.msra.mxu0 %v588_v34  ;;  %v755_v34 = vld [vmem:[#allocation15 + $0x50] sm:$0xff] }
  0xc4   :  { %v258_v11 = vmax.f32 %v255_v10, 0.0 }
  0xc5   :  { %v278_v12 = vld [vmem:[#allocation2 + $0x6] sm:$0xff]  ;;  %647 = vmatpush.msra.mxu0 %v587_v37  ;;  %v827_v37 = vld [vmem:[#allocation15 + $0xf8] sm:$0xff] }
  0xc6   :  { %v346_v13 = vld [vmem:[#allocation2 + $0x7] sm:$0xff]  ;;  %260 = vst [vmem:[#allocation2 + $0x10] sm:$0xff] %v258_v11  ;;  %1097 = vmatmul.msk.f32.vlgmr.msrb.gmra.mxu1 %vm280_vm1, %v278_v12  ;;  %342 = vmatmul.f32.gmra.mxu2 %v258_v11 }
  0xc7   :  { %1098 = vmatmul.msk.f32.vlgmr.msra.gmra.mxu3 %vm348_vm2, %v346_v13  ;;  %683 = vmatpush.msrb.mxu1 %v682_v62  ;;  %v670_v62 = vld [vmem:[#allocation14 + $0x98] sm:$0xff] }
  0xc8   :  { %648 = vmatpush.msra.mxu0 %v586_v40  ;;  %v754_v40 = vld [vmem:[#allocation15 + $0x48] sm:$0xff] }
  0xc9   :  { %684 = vmatpush.msrb.mxu1 %v681_v29 }
  0xca   :  { %649 = vmatpush.msra.mxu0 %v585_v43  ;;  %v752_v43 = vld [vmem:[#allocation15 + $0x38] sm:$0xff] }
  0xcb   :  { %v426_v60 = vpop.f32.mrf.mxu0  ;;  %685 = vmatpush.msrb.mxu1 %v680_v32  ;;  %v757_v32 = vld [vmem:[#allocation15 + $0x60] sm:$0xff] }
  0xcc   :  { %v427_v7 = vadd.f32 %v1123_v1, %v426_v60  ;;  %650 = vmatpush.msra.mxu0 %v584_v46  ;;  %v671_v60 = vld [vmem:[#allocation14 + $0xa0] sm:$0xff]  ;;  %v825_v46 = vld [vmem:[#allocation15 + $0xe8] sm:$0xff] }
  0xcd   :  { %v279_v14 = vld [vmem:[#allocation2 + $0xe] sm:$0xff]  ;;  %686 = vmatpush.msrb.mxu1 %v679_v35  ;;  %v736_v35 = vld [vmem:[#allocation15 + $0x168] sm:$0xff] }
  0xce   :  { %v347_v15 = vld [vmem:[#allocation2 + $0xf] sm:$0xff]  ;;  %319 = vmatmul.f32.gmra.mxu1 %v279_v14  ;;  %651 = vmatpush.msra.mxu0 %v583_v50  ;;  %v750_v50 = vld [vmem:[#allocation15 + $0x28] sm:$0xff] }
  0xcf   :  { %388 = vmatmul.f32.gmra.mxu3 %v347_v15  ;;  %687 = vmatpush.msrb.mxu1 %v678_v38  ;;  %v826_v38 = vld [vmem:[#allocation15 + $0xf0] sm:$0xff] }
  0xd0   :  { %652 = vmatpush.msra.mxu0 %v582_v53  ;;  %v749_v53 = vld [vmem:[#allocation15 + $0x20] sm:$0xff] }
  0xd1   :  { %688 = vmatpush.msrb.mxu1 %v677_v41  ;;  %v753_v41 = vld [vmem:[#allocation15 + $0x40] sm:$0xff] }
  0xd3   :  { %v429_v15 = vpop.f32.mrf.mxu0  ;;  %689 = vmatpush.msrb.mxu1 %v676_v44  ;;  %v751_v44 = vld [vmem:[#allocation15 + $0x30] sm:$0xff] }
  0xd4   :  { %v430_v19 = vadd.f32 %v1123_v1, %v429_v15  ;;  %v601_v1 = vld [vmem:[#allocation14 + $0x8] sm:$0xff] }
  0xd5   :  { %690 = vmatpush.msrb.mxu1 %v675_v48  ;;  %v731_v48 = vld [vmem:[#allocation15 + $0x140] sm:$0xff] }
  0xd7   :  { %691 = vmatpush.msrb.mxu1 %v674_v51  ;;  %v730_v51 = vld [vmem:[#allocation15 + $0x138] sm:$0xff] }
  0xd9   :  { %692 = vmatpush.msrb.mxu1 %v673_v54  ;;  %v748_v54 = vld [vmem:[#allocation15 + $0x18] sm:$0xff] }
  0xdb   :  { %693 = vmatpush.msrb.mxu1 %v672_v57  ;;  %v747_v57 = vld [vmem:[#allocation15 + $0x10] sm:$0xff] }
  0xdd   :  { %694 = vmatpush.msrb.mxu1 %v671_v60  ;;  %v746_v60 = vld [vmem:[#allocation15 + $0x8] sm:$0xff] }
  0xdf   :  { %695 = vmatpush.msrb.mxu1 %v670_v62  ;;  %v820_v62 = vld [vmem:[#allocation15 + $0xc0] sm:$0xff] }
 0x141   :  { %v340_v56 = vpop.f32.mrf.mxu2 }
 0x143   :  { %v317_v55 = vpop.f32.mrf.mxu1 }
 0x144   :  { %v341_v63 = vadd.f32 %v340_v56, %v317_v55  ;;  %v605_v55 = vld [vmem:[#allocation14 + $0x28] sm:$0xff] }
 0x145   :  { %v581_v56 = vld [vmem:[#allocation14 + $0x108] sm:$0xff]  ;;  %626 = vmatpush.msrb.mxu3 %v605_v55  ;;  %v729_v55 = vld [vmem:[#allocation15 + $0x130] sm:$0xff] }
 0x146   :  { %653 = vmatpush.msra.mxu0 %v581_v56  ;;  %v822_v56 = vld [vmem:[#allocation15 + $0xd0] sm:$0xff] }
 0x147   :  { %627 = vmatpush.msrb.mxu3 %v604_v58  ;;  %v728_v58 = vld [vmem:[#allocation15 + $0x128] sm:$0xff] }
 0x148   :  { %654 = vmatpush.msra.mxu0 %v580_v59  ;;  %v821_v59 = vld [vmem:[#allocation15 + $0xc8] sm:$0xff] }
 0x149   :  { %v343_v11 = vpop.f32.mrf.mxu2  ;;  %628 = vmatpush.msrb.mxu3 %v603_v61  ;;  %v727_v61 = vld [vmem:[#allocation15 + $0x120] sm:$0xff] }
 0x14a   :  { %v386_v2 = vpop.f32.mrf.mxu3 }
 0x14b   :  { %v392_v4 = vadd.f32 %v386_v2, %v341_v63  ;;  %v320_v9 = vpop.f32.mrf.mxu1  ;;  %v602_v63 = vld [vmem:[#allocation14 + $0x10] sm:$0xff]  ;;  %v668_v2 = vld [vmem:[#allocation14 + $0x88] sm:$0xff] }
 0x14c   :  { %v344_v12 = vadd.f32 %v343_v11, %v320_v9  ;;  %629 = vmatpush.msrb.mxu3 %v602_v63  ;;  %v737_v9 = vld [vmem:[#allocation15 + $0x170] sm:$0xff]  ;;  %v745_v63 = vld [vmem:[#allocation15] sm:$0xff] }
 0x14d   :  { %v398_v6 = vadd.f32 %v1122_v0, %v392_v4  ;;  %v667_v4 = vld [vmem:[#allocation14 + $0x80] sm:$0xff] }
 0x14e   :  { %630 = vmatpush.msrb.mxu3 %v601_v1  ;;  %v819_v1 = vld [vmem:[#allocation15 + $0xb8] sm:$0xff] }
 0x14f   :  { %v400_v10 = vmax.f32 %v398_v6, 0.0  ;;  %v738_v6 = vld [vmem:[#allocation15 + $0x178] sm:$0xff] }
 0x150   :  { %631 = vmatpush.msrb.mxu3 %v600_v3  ;;  %v818_v3 = vld [vmem:[#allocation15 + $0xb0] sm:$0xff] }
 0x151   :  { %v432_v13 = vadd.f32 %v427_v7, %v400_v10  ;;  %v759_v7 = vld [vmem:[#allocation15 + $0x70] sm:$0xff] }
 0x152   :  { %v389_v14 = vpop.f32.mrf.mxu3  ;;  %784 = vmatpush.msra.mxu3 %v738_v6  ;;  %762 = vmatpush.msra.mxu2 %v759_v7  ;;  %v723_v6 = vld [vmem:[#allocation15 + $0x100] sm:$0xff] }
 0x153   :  { %v1603_v16 = vmax.f32 %v432_v13, 0.0  ;;  %v393_v17 = vadd.f32 %v389_v14, %v344_v12  ;;  %v1124_v13 = vld [vmem:[%s1668_s9] ss:$0 sm:$0xff] }
 0x154   :  { %785 = vmatpush.msra.mxu3 %v737_v9  ;;  %763 = vmatpush.msra.mxu2 %v758_v31  ;;  %v816_v7 = vld [vmem:[#allocation15 + $0xa0] sm:$0xff]  ;;  %v815_v9 = vld [vmem:[#allocation15 + $0x98] sm:$0xff] }
 0x155   :  { %436 = vst [vmem:[#allocation2 + $0x8] sm:$0xff] %v1603_v16  ;;  %v399_v18 = vadd.f32 %v1122_v0, %v393_v17  ;;  %516 = vmatmul.f32.vlgmr.msra.gmra.mxu1 %v1603_v16  ;;  %v669_v0 = vld [vmem:[#allocation14 + $0x90] sm:$0xff] }
 0x156   :  { %696 = vmatpush.msrb.mxu1 %v669_v0  ;;  %764 = vmatpush.msra.mxu2 %v757_v32  ;;  %v726_v0 = vld [vmem:[#allocation15 + $0x118] sm:$0xff] }
 0x157   :  { %v401_v20 = vmax.f32 %v399_v18, 0.0  ;;  %786 = vmatpush.msra.mxu3 %v736_v35  ;;  %v895_v32 = vld [vmem:[#allocation17 + $0x58] sm:$0xff] }
 0x158   :  { %697 = vmatpush.msrb.mxu1 %v668_v2  ;;  %765 = vmatpush.msra.mxu2 %v756_v33  ;;  %v725_v2 = vld [vmem:[#allocation15 + $0x110] sm:$0xff]  ;;  %v875_v33 = vld [vmem:[#allocation17 + $0x158] sm:$0xff] }
 0x159   :  { %v433_v21 = vadd.f32 %v430_v19, %v401_v20  ;;  %787 = vmatpush.msra.mxu3 %v735_v36  ;;  %v894_v36 = vld [vmem:[#allocation17 + $0x50] sm:$0xff] }
 0x15a   :  { %698 = vmatpush.msrb.mxu1 %v667_v4  ;;  %766 = vmatpush.msra.mxu2 %v755_v34  ;;  %v724_v4 = vld [vmem:[#allocation15 + $0x108] sm:$0xff]  ;;  %v963_v34 = vld [vmem:[#allocation17 + $0xe0] sm:$0xff] }
 0x15b   :  { %v1608_v22 = vmax.f32 %v433_v21, 0.0  ;;  %788 = vmatpush.msra.mxu3 %v734_v39 }
 0x15c   :  { %v455_v23 = vld [vmem:[#allocation2 + $0x4] sm:$0xff]  ;;  %767 = vmatpush.msra.mxu2 %v754_v40 }
 0x15d   :  { %v523_v24 = vld [vmem:[#allocation2 + $0x6] sm:$0xff]  ;;  %437 = vst [vmem:[#allocation2 + $0x10] sm:$0xff] %v1608_v22  ;;  %1101 = vmatmul.msk.f32.vlgmr.msrb.gmra.mxu0 %vm457_vm3, %v455_v23  ;;  %519 = vmatmul.f32.gmra.mxu1 %v1608_v22 }
 0x15e   :  { %1102 = vmatmul.msk.f32.vlgmr.msrb.gmra.mxu2 %vm280_vm1, %v523_v24  ;;  %828 = vmatpush.msrb.mxu0 %v827_v37  ;;  %v874_v37 = vld [vmem:[#allocation17 + $0x150] sm:$0xff]  ;;  %v893_v40 = vld [vmem:[#allocation17 + $0x48] sm:$0xff] }
 0x15f   :  { %768 = vmatpush.msra.mxu2 %v753_v41  ;;  %789 = vmatpush.msra.mxu3 %v733_v42  ;;  %v873_v41 = vld [vmem:[#allocation17 + $0x148] sm:$0xff] }
 0x160   :  { %829 = vmatpush.msrb.mxu0 %v826_v38  ;;  %v962_v38 = vld [vmem:[#allocation17 + $0xd8] sm:$0xff] }
 0x161   :  { %769 = vmatpush.msra.mxu2 %v752_v43  ;;  %790 = vmatpush.msra.mxu3 %v732_v45 }
 0x162   :  { %830 = vmatpush.msrb.mxu0 %v825_v46 }
 0x163   :  { %770 = vmatpush.msra.mxu2 %v751_v44  ;;  %791 = vmatpush.msra.mxu3 %v731_v48  ;;  %v961_v44 = vld [vmem:[#allocation17 + $0xd0] sm:$0xff]  ;;  %v892_v48 = vld [vmem:[#allocation17 + $0x40] sm:$0xff] }
 0x164   :  { %v456_v25 = vld [vmem:[#allocation2 + $0xc] sm:$0xff]  ;;  %831 = vmatpush.msrb.mxu0 %v824_v49  ;;  %v872_v49 = vld [vmem:[#allocation17 + $0x140] sm:$0xff] }
 0x165   :  { %v524_v26 = vld [vmem:[#allocation2 + $0xe] sm:$0xff]  ;;  %496 = vmatmul.f32.gmra.mxu0 %v456_v25  ;;  %771 = vmatpush.msra.mxu2 %v750_v50 }
 0x166   :  { %563 = vmatmul.f32.gmra.mxu2 %v524_v26  ;;  %792 = vmatpush.msra.mxu3 %v730_v51 }
 0x167   :  { %832 = vmatpush.msrb.mxu0 %v823_v52  ;;  %772 = vmatpush.msra.mxu2 %v749_v53  ;;  %v891_v53 = vld [vmem:[#allocation17 + $0x38] sm:$0xff] }
 0x168   :  { %793 = vmatpush.msra.mxu3 %v729_v55  ;;  %v960_v55 = vld [vmem:[#allocation17 + $0xc8] sm:$0xff] }
 0x169   :  { %833 = vmatpush.msrb.mxu0 %v822_v56  ;;  %773 = vmatpush.msra.mxu2 %v748_v54  ;;  %v871_v54 = vld [vmem:[#allocation17 + $0x138] sm:$0xff] }
 0x16a   :  { %794 = vmatpush.msra.mxu3 %v728_v58 }
 0x16b   :  { %834 = vmatpush.msrb.mxu0 %v821_v59  ;;  %774 = vmatpush.msra.mxu2 %v747_v57  ;;  %v870_v57 = vld [vmem:[#allocation17 + $0x130] sm:$0xff]  ;;  %v889_v59 = vld [vmem:[#allocation17 + $0x28] sm:$0xff] }
 0x16c   :  { %795 = vmatpush.msra.mxu3 %v727_v61 }
 0x16d   :  { %835 = vmatpush.msrb.mxu0 %v820_v62  ;;  %775 = vmatpush.msra.mxu2 %v746_v60  ;;  %v869_v60 = vld [vmem:[#allocation17 + $0x128] sm:$0xff] }
 0x16e   :  { %796 = vmatpush.msra.mxu3 %v726_v0 }
 0x16f   :  { %836 = vmatpush.msrb.mxu0 %v819_v1  ;;  %776 = vmatpush.msra.mxu2 %v745_v63  ;;  %v888_v1 = vld [vmem:[#allocation17 + $0x20] sm:$0xff] }
 0x170   :  { %797 = vmatpush.msra.mxu3 %v725_v2  ;;  %777 = vmatmul.f32.vlgmr.msra.gmra.mxu2 %v1421_v47  ;;  %v887_v2 = vld [vmem:[#allocation17 + $0x18] sm:$0xff] }
 0x171   :  { %837 = vmatpush.msrb.mxu0 %v818_v3  ;;  %v886_v3 = vld [vmem:[#allocation17 + $0x10] sm:$0xff] }
 0x172   :  { %798 = vmatpush.msra.mxu3 %v724_v4  ;;  %v868_v4 = vld [vmem:[#allocation17 + $0x120] sm:$0xff] }
 0x173   :  { %838 = vmatpush.msrb.mxu0 %v817_v5  ;;  %v959_v5 = vld [vmem:[#allocation17 + $0xc0] sm:$0xff] }
 0x174   :  { %799 = vmatpush.msra.mxu3 %v723_v6  ;;  %v884_v6 = vld [vmem:[#allocation17] sm:$0xff] }
 0x175   :  { %839 = vmatpush.msrb.mxu0 %v816_v7  ;;  %v867_v7 = vld [vmem:[#allocation17 + $0x118] sm:$0xff] }
 0x177   :  { %840 = vmatpush.msrb.mxu0 %v815_v9  ;;  %v958_v9 = vld [vmem:[#allocation17 + $0xb8] sm:$0xff] }
 0x1d2   :  { %v517_v11 = vpop.f32.mrf.mxu1 }
 0x1da   :  { %v494_v10 = vpop.f32.mrf.mxu0  ;;  %v520_v20 = vpop.f32.mrf.mxu1 }
 0x1db   :  { %v518_v12 = vadd.f32 %v517_v11, %v494_v10  ;;  %v814_v10 = vld [vmem:[#allocation15 + $0x90] sm:$0xff]  ;;  %v813_v11 = vld [vmem:[#allocation15 + $0x88] sm:$0xff] }
 0x1dc   :  { %841 = vmatpush.msrb.mxu0 %v814_v10  ;;  %v866_v10 = vld [vmem:[#allocation17 + $0x110] sm:$0xff] }
 0x1de   :  { %842 = vmatpush.msrb.mxu0 %v813_v11  ;;  %v957_v11 = vld [vmem:[#allocation17 + $0xb0] sm:$0xff] }
 0x1e1   :  { %v561_v14 = vpop.f32.mrf.mxu2 }
 0x1e2   :  { %v567_v15 = vadd.f32 %v561_v14, %v518_v12  ;;  %v497_v18 = vpop.f32.mrf.mxu0  ;;  %v812_v12 = vld [vmem:[#allocation15 + $0x80] sm:$0xff]  ;;  %v879_v14 = vld [vmem:[#allocation17 + $0x178] sm:$0xff] }
 0x1e3   :  { %v521_v21 = vadd.f32 %v520_v20, %v497_v18  ;;  %843 = vmatpush.msrb.mxu0 %v812_v12  ;;  %923 = vmatpush.msrb.mxu2 %v879_v14  ;;  %v878_v18 = vld [vmem:[#allocation17 + $0x170] sm:$0xff]  ;;  %v877_v20 = vld [vmem:[#allocation17 + $0x168] sm:$0xff]  ;;  %v864_v14 = vld [vmem:[#allocation17 + $0x100] sm:$0xff] }
 0x1e4   :  { %v573_v17 = vadd.f32 %v1124_v13, %v567_v15  ;;  %v898_v15 = vld [vmem:[#allocation17 + $0x70] sm:$0xff]  ;;  %v865_v12 = vld [vmem:[#allocation17 + $0x108] sm:$0xff] }
 0x1e5   :  { %924 = vmatpush.msrb.mxu2 %v878_v18  ;;  %v953_v18 = vld [vmem:[#allocation17 + $0x90] sm:$0xff] }
 0x1e6   :  { %v575_v19 = vmax.f32 %v573_v17, 0.0 }
 0x1e7   :  { %925 = vmatpush.msrb.mxu2 %v877_v20  ;;  %v951_v20 = vld [vmem:[#allocation17 + $0x80] sm:$0xff] }
 0x1e8   :  { %577 = vst [vmem:[#allocation2 + $0x8] sm:$0xff] %v575_v19  ;;  %655 = vmatmul.f32.vlgmr.msra.gmra.mxu0 %v575_v19  ;;  %v897_v19 = vld [vmem:[#allocation17 + $0x68] sm:$0xff] }
 0x1e9   :  { %v564_v23 = vpop.f32.mrf.mxu2 }
 0x1ea   :  { %v568_v24 = vadd.f32 %v564_v23, %v521_v21 }
 0x1ec   :  { %v574_v25 = vadd.f32 %v1124_v13, %v568_v24  ;;  %v899_v13 = vld [vmem:[#allocation17 + $0x78] sm:$0xff]  ;;  %v1125_v24 = vld [vmem:[%s1670_s11] ss:$0 sm:$0xff] }
 0x1ed   :  { %900 = vmatpush.msra.mxu1 %v899_v13  ;;  %v956_v13 = vld [vmem:[#allocation17 + $0xa8] sm:$0xff] }
 0x1ee   :  { %v576_v26 = vmax.f32 %v574_v25, 0.0  ;;  %v966_v25 = vld [vmem:[#allocation17 + $0xf8] sm:$0xff] }
 0x1ef   :  { %v596_v27 = vld [vmem:[#allocation2 + $0x4] sm:$0xff]  ;;  %901 = vmatpush.msra.mxu1 %v898_v15  ;;  %v955_v15 = vld [vmem:[#allocation17 + $0xa0] sm:$0xff] }
 0x1f0   :  { %v662_v28 = vld [vmem:[#allocation2 + $0x6] sm:$0xff]  ;;  %1103 = vmatmul.msk.f32.vlgmr.msrb.gmra.mxu3 %vm457_vm3, %v596_v27  ;;  %578 = vst [vmem:[#allocation2 + $0x10] sm:$0xff] %v576_v26  ;;  %658 = vmatmul.f32.gmra.mxu0 %v576_v26  ;;  %v896_v27 = vld [vmem:[#allocation17 + $0x60] sm:$0xff] }
 0x1f1   :  { %1104 = vmatmul.msk.f32.vlgmr.msrb.gmra.mxu1 %vm280_vm1, %v662_v28  ;;  %v876_v28 = vld [vmem:[#allocation17 + $0x160] sm:$0xff]  ;;  %967 = vmatpush.msrb.mxu3 %v966_v25 }
 0x1f2   :  { %902 = vmatpush.msra.mxu1 %v897_v19  ;;  %926 = vmatpush.msrb.mxu2 %v876_v28  ;;  %v952_v19 = vld [vmem:[#allocation17 + $0x88] sm:$0xff] }
 0x1f4   :  { %903 = vmatpush.msra.mxu1 %v896_v27  ;;  %927 = vmatpush.msrb.mxu2 %v875_v33 }
 0x1f6   :  { %904 = vmatpush.msra.mxu1 %v895_v32  ;;  %928 = vmatpush.msrb.mxu2 %v874_v37 }
 0x1f7   :  { %v597_v29 = vld [vmem:[#allocation2 + $0xc] sm:$0xff] }
 0x1f8   :  { %v663_v30 = vld [vmem:[#allocation2 + $0xe] sm:$0xff]  ;;  %635 = vmatmul.f32.gmra.mxu3 %v597_v29  ;;  %905 = vmatpush.msra.mxu1 %v894_v36 }
 0x1f9   :  { %702 = vmatmul.f32.gmra.mxu1 %v663_v30  ;;  %v965_v29 = vld [vmem:[#allocation17 + $0xf0] sm:$0xff]  ;;  %v964_v30 = vld [vmem:[#allocation17 + $0xe8] sm:$0xff]  ;;  %929 = vmatpush.msrb.mxu2 %v873_v41  ;;  %v1047_v41 = vld [vmem:[#allocation18 + $0x60] sm:$0xff] }
 0x1fa   :  { %968 = vmatpush.msrb.mxu3 %v965_v29  ;;  %906 = vmatpush.msra.mxu1 %v893_v40  ;;  %v1048_v40 = vld [vmem:[#allocation18 + $0x68] sm:$0xff] }
 0x1fb   :  { %930 = vmatpush.msrb.mxu2 %v872_v49  ;;  %v1004_v49 = vld [vmem:[#allocation6] sm:$0x1] }
 0x1fc   :  { %969 = vmatpush.msrb.mxu3 %v964_v30  ;;  %907 = vmatpush.msra.mxu1 %v892_v48  ;;  %v1041_v48 = vld [vmem:[#allocation18 + $0x30] sm:$0xff] }
 0x1fd   :  { %931 = vmatpush.msrb.mxu2 %v871_v54  ;;  %v1017_v54 = vcvt.s32.f32 %v1004_v49 }
 0x1fe   :  { %970 = vmatpush.msrb.mxu3 %v963_v34  ;;  %908 = vmatpush.msra.mxu1 %v891_v53  ;;  %v1039_v53 = vld [vmem:[#allocation18 + $0x20] sm:$0xff] }
 0x1ff   :  { %932 = vmatpush.msrb.mxu2 %v870_v57 }
 0x200   :  { %971 = vmatpush.msrb.mxu3 %v962_v38  ;;  %v1050_v38 = vld [vmem:[#allocation18 + $0x78] sm:$0xff] }
 0x201   :  { %933 = vmatpush.msrb.mxu2 %v869_v60  ;;  %1052 = vmatpush.msra.mxu0 %v1050_v38  ;;  %v1036_v60 = vld [vmem:[#allocation18 + $0x8] sm:$0xff] }
 0x202   :  { %972 = vmatpush.msrb.mxu3 %v961_v44  ;;  %v1044_v44 = vld [vmem:[#allocation18 + $0x48] sm:$0xff] }
 0x203   :  { %934 = vmatpush.msrb.mxu2 %v868_v4 }
 0x204   :  { %973 = vmatpush.msrb.mxu3 %v960_v55  ;;  %v1038_v55 = vld [vmem:[#allocation18 + $0x18] sm:$0xff] }
 0x205   :  { %935 = vmatpush.msrb.mxu2 %v867_v7 }
 0x206   :  { %974 = vmatpush.msrb.mxu3 %v959_v5 }
 0x207   :  { %936 = vmatpush.msrb.mxu2 %v866_v10 }
 0x208   :  { %975 = vmatpush.msrb.mxu3 %v958_v9 }
 0x209   :  { %937 = vmatpush.msrb.mxu2 %v865_v12  ;;  %v216_v12 = vadd.s32 8, %v1591_v8 }
 0x20a   :  { %976 = vmatpush.msrb.mxu3 %v957_v11  ;;  %v1128_v11 = vld [vmem:[#allocation6] ss:$0 sm:$0xff] }
 0x20b   :  { %938 = vmatpush.msrb.mxu2 %v864_v14  ;;  %vm1006_vm4 = vcmp.lt.s32.totalorder %v1591_v8, %v1128_v11  ;;  %vm1007_vm5 = vcmp.lt.s32.totalorder %v216_v12, %v1128_v11 }
 0x20c   :  { %977 = vmatpush.msrb.mxu3 %v956_v13 }
 0x20e   :  { %978 = vmatpush.msrb.mxu3 %v955_v15 }
 0x265   :  { %v656_v17 = vpop.f32.mrf.mxu0 }
 0x26d   :  { %v659_v42 = vpop.f32.mrf.mxu0 }
 0x26e   :  { %v700_v21 = vpop.f32.mrf.mxu1 }
 0x273   :  { %v633_v23 = vpop.f32.mrf.mxu3 }
 0x274   :  { %v657_v26 = vadd.f32 %v656_v17, %v633_v23  ;;  %v954_v17 = vld [vmem:[#allocation17 + $0x98] sm:$0xff] }
 0x275   :  { %979 = vmatpush.msrb.mxu3 %v954_v17 }
 0x276   :  { %v706_v31 = vadd.f32 %v700_v21, %v657_v26  ;;  %v703_v50 = vpop.f32.mrf.mxu1  ;;  %v778_v21 = vpop.f32.mrf.mxu2 }
 0x277   :  { %980 = vmatpush.msrb.mxu3 %v953_v18 }
 0x278   :  { %v712_v35 = vadd.f32 %v1125_v24, %v706_v31 }
 0x279   :  { %981 = vmatpush.msrb.mxu3 %v952_v19 }
 0x27a   :  { %v714_v39 = vmax.f32 %v712_v35, 0.0 }
 0x27b   :  { %v636_v43 = vpop.f32.mrf.mxu3  ;;  %982 = vmatpush.msrb.mxu3 %v951_v20 }
 0x27c   :  { %v716_v45 = vadd.f32 %v714_v39, %v1603_v16  ;;  %v660_v46 = vadd.f32 %v659_v42, %v636_v43  ;;  %v890_v16 = vld [vmem:[#allocation17 + $0x30] sm:$0xff]  ;;  %v1046_v42 = vld [vmem:[#allocation18 + $0x58] sm:$0xff] }
 0x27d   :  { %909 = vmatpush.msra.mxu1 %v890_v16  ;;  %v1049_v39 = vld [vmem:[#allocation18 + $0x70] sm:$0xff] }
 0x27e   :  { %v707_v51 = vadd.f32 %v703_v50, %v660_v46  ;;  %v1628_v52 = vmax.f32 %v716_v45, 0.0  ;;  %1053 = vmatpush.msra.mxu0 %v1049_v39  ;;  %v1045_v43 = vld [vmem:[#allocation18 + $0x50] sm:$0xff]  ;;  %v1043_v45 = vld [vmem:[#allocation18 + $0x40] sm:$0xff]  ;;  %v1042_v46 = vld [vmem:[#allocation18 + $0x38] sm:$0xff] }
 0x27f   :  { %910 = vmatpush.msra.mxu1 %v889_v59  ;;  %v1040_v50 = vld [vmem:[#allocation18 + $0x28] sm:$0xff]  ;;  %v1037_v16 = vld [vmem:[#allocation18 + $0x10] sm:$0xff]  ;;  %v1018_v59 = vmax.f32 %v1017_v54, 1.0 }
 0x280   :  { %v713_v56 = vadd.f32 %v1125_v24, %v707_v51  ;;  %800 = vmatmul.f32.vlgmr.msra.gmra.mxu3 %v1628_v52  ;;  %720 = vst [vmem:[#allocation2 + $0x8] sm:$0xff] %v1628_v52  ;;  %780 = vmatmul.f32.gmra.mxu2 %v1628_v52  ;;  %v1126_v24 = vld [vmem:[%s1672_s13] ss:$0 sm:$0xff] }
 0x281   :  { %911 = vmatpush.msra.mxu1 %v888_v1  ;;  %1054 = vmatpush.msra.mxu0 %v1048_v40  ;;  %1129 = vrcp.f32 %v1018_v59  ;;  %vm1024_vm6 = vweird.f32 %v1018_v59 }
 0x282   :  { %v715_v58 = vmax.f32 %v713_v56, 0.0 }
 0x283   :  { %912 = vmatpush.msra.mxu1 %v887_v2  ;;  %1055 = vmatpush.msra.mxu0 %v1047_v41 }
 0x284   :  { %v717_v61 = vadd.f32 %v715_v58, %v1608_v22  ;;  %v885_v22 = vld [vmem:[#allocation17 + $0x8] sm:$0xff]  ;;  %v1127_v58 = vld [vmem:[%s1674_s15] ss:$0 sm:$0xff] }
 0x285   :  { %913 = vmatpush.msra.mxu1 %v886_v3  ;;  %1056 = vmatpush.msra.mxu0 %v1046_v42 }
 0x286   :  { %v1634_v62 = vmax.f32 %v717_v61, 0.0 }
 0x287   :  { %v807_v63 = vld [vmem:[#allocation2 + $0x4] sm:$0xff]  ;;  %914 = vmatpush.msra.mxu1 %v885_v22  ;;  %1057 = vmatpush.msra.mxu0 %v1045_v43 }
 0x288   :  { %803 = vmatmul.f32.gmra.mxu3 %v1634_v62  ;;  %721 = vst [vmem:[#allocation2 + $0x10] sm:$0xff] %v1634_v62  ;;  %1105 = vmatmul.msk.f32.vlgmr.msrb.gmra.mxu0 %vm457_vm3, %v807_v63 }
 0x289   :  { %915 = vmatpush.msra.mxu1 %v884_v6  ;;  %1058 = vmatpush.msra.mxu0 %v1044_v44  ;;  %v1130_v6 = vpop.eup %1129 }
 0x28a   :  { %916 = vmatmul.f32.vlgmr.msra.gmra.mxu1 %v1421_v47  ;;  %v1020_v13 = vmul.f32 %v1130_v6, %v1018_v59  ;;  %vm1025_vm7 = vweird.f32 %v1130_v6 }
 0x28b   :  { %1059 = vmatpush.msra.mxu0 %v1043_v45  ;;  %vm1026_vm8 = vmor %vm1024_vm6, %vm1025_vm7 }
 0x28c   :  { %v1021_v18 = vsub.f32 1.0, %v1020_v13 }
 0x28d   :  { %1060 = vmatpush.msra.mxu0 %v1042_v46 }
 0x28f   :  { %v808_v0 = vld [vmem:[#allocation2 + $0xc] sm:$0xff]  ;;  %1061 = vmatpush.msra.mxu0 %v1041_v48 }
 0x290   :  { %847 = vmatmul.f32.gmra.mxu0 %v808_v0  ;;  %v1035_v0 = vld [vmem:[#allocation18] sm:$0xff] }
 0x291   :  { %1062 = vmatpush.msra.mxu0 %v1040_v50 }
 0x293   :  { %1063 = vmatpush.msra.mxu0 %v1039_v53 }
 0x295   :  { %1064 = vmatpush.msra.mxu0 %v1038_v55 }
 0x297   :  { %1065 = vmatpush.msra.mxu0 %v1037_v16 }
 0x299   :  { %1066 = vmatpush.msra.mxu0 %v1036_v60 }
 0x29b   :  { %1067 = vmatpush.msra.mxu0 %v1035_v0 }
 0x303   :  { %v801_v47 = vpop.f32.mrf.mxu3  ;;  %v781_v29 = vpop.f32.mrf.mxu2 }
 0x304   :  { %v802_v23 = vadd.f32 %v801_v47, %v778_v21 }
 0x305   :  { %v845_v25 = vpop.f32.mrf.mxu0 }
 0x306   :  { %v851_v26 = vadd.f32 %v845_v25, %v802_v23  ;;  %v1022_v23 = vmul.f32 %v1130_v6, %v1021_v18 }
 0x307   :  { %v917_v56 = vpop.f32.mrf.mxu1 }
 0x308   :  { %v857_v27 = vadd.f32 %v1126_v24, %v851_v26  ;;  %v1023_v26 = vadd.f32 %v1130_v6, %v1022_v23 }
 0x30a   :  { %v859_v28 = vmax.f32 %v857_v27, 0.0  ;;  %v1028_v27 = vand.u32 2147483647, %v1018_v59 }
 0x30b   :  { %v804_v30 = vpop.f32.mrf.mxu3 }
 0x30c   :  { %861 = vst [vmem:[#allocation2 + $0x8] sm:$0xff] %v859_v28  ;;  %v805_v31 = vadd.f32 %v804_v30, %v781_v29  ;;  %939 = vmatmul.f32.vlgmr.msrb.gmra.mxu2 %v859_v28  ;;  %919 = vmatmul.f32.gmra.mxu1 %v859_v28  ;;  %v1027_v30 = vsel %vm1026_vm8, %v1130_v6, %v1023_v26  ;;  %vm1029_vm9 = vcmp.eq.f32.partialorder %v1028_v27, 8.507059e+37 }
 0x30d   :  { %v848_v32 = vpop.f32.mrf.mxu0 }
 0x30e   :  { %v852_v33 = vadd.f32 %v848_v32, %v805_v31 }
 0x310   :  { %v858_v34 = vadd.f32 %v1126_v24, %v852_v33 }
 0x312   :  { %v860_v35 = vmax.f32 %v858_v34, 0.0  ;;  %v1051_v34 = vld [vmem:[%s1676_s17] sm:$0x1] }
 0x313   :  { %v946_v36 = vld [vmem:[#allocation2 + $0x4] sm:$0xff] }
 0x314   :  { %942 = vmatmul.f32.gmra.mxu2 %v860_v35  ;;  %862 = vst [vmem:[#allocation2 + $0x10] sm:$0xff] %v860_v35  ;;  %1106 = vmatmul.msk.f32.vlgmr.msrb.gmra.mxu3 %vm457_vm3, %v946_v36 }
 0x31b   :  { %v947_v37 = vld [vmem:[#allocation2 + $0xc] sm:$0xff] }
 0x31c   :  { %986 = vmatmul.f32.gmra.mxu3 %v947_v37 }
 0x389   :  { %v920_v3 = vpop.f32.mrf.mxu1 }
 0x38f   :  { %v940_v51 = vpop.f32.mrf.mxu2 }
 0x390   :  { %v941_v57 = vadd.f32 %v940_v51, %v917_v56 }
 0x397   :  { %v984_v61 = vpop.f32.mrf.mxu3  ;;  %v943_v2 = vpop.f32.mrf.mxu2 }
 0x398   :  { %v990_v63 = vadd.f32 %v984_v61, %v941_v57  ;;  %v944_v22 = vadd.f32 %v943_v2, %v920_v3 }
 0x39a   :  { %v996_v1 = vadd.f32 %v1127_v58, %v990_v63 }
 0x39c   :  { %v998_v4 = vmax.f32 %v996_v1, 0.0 }
 0x39e   :  { %v1000_v9 = vadd.f32 %v998_v4, %v1628_v52  ;;  %v1030_v52 = vand.u32 2147483648, %v1018_v59 }
 0x39f   :  { %v987_v5 = vpop.f32.mrf.mxu3 }
 0x3a0   :  { %v991_v7 = vadd.f32 %v987_v5, %v944_v22  ;;  %v1002_v15 = vmax.f32 %v1000_v9, 0.0  ;;  %v1031_v29 = vor.u32 1.1754944e-38, %v1030_v52 }
 0x3a2   :  { %v997_v10 = vadd.f32 %v1127_v58, %v991_v7  ;;  %v1008_v20 = vsel %vm1006_vm4, %v1002_v15, 0.0  ;;  %v1032_v31 = vsel %vm1029_vm9, %v1031_v29, %v1027_v30 }
 0x3a4   :  { %v999_v14 = vmax.f32 %v997_v10, 0.0 }
 0x3a6   :  { %v1001_v17 = vadd.f32 %v999_v14, %v1634_v62 }
 0x3a8   :  { %v1003_v19 = vmax.f32 %v1001_v17, 0.0 }
 0x3aa   :  { %v1009_v21 = vsel %vm1007_vm5, %v1003_v19, 0.0 }
 0x3ab   :  { %v1010_v47 = vadd.f32 %v1009_v21, %v1008_v20 }
 0x3ad   :  { %v1011_v24 = vrot.slane %v1010_v47, 4 }
 0x3af   :  { %v1012_v25 = vadd.f32 %v1011_v24, %v1010_v47 }
 0x3b1   :  { %v1013_v28 = vrot.slane %v1012_v25, 2 }
 0x3b3   :  { %v1014_v62 = vadd.f32 %v1013_v28, %v1012_v25 }
 0x3b5   :  { %v1015_v8 = vrot.slane %v1014_v62, 1 }
 0x3b7   :  { %v1016_v32 = vadd.f32 %v1015_v8, %v1014_v62 }
 0x3b9   :  { %v1034_v33 = vmul.f32 %v1032_v31, %v1016_v32 }
 0x3bb   :  { %1068 = vmatmul.f32.vlgmr.msra.gmra.mxu0 %v1034_v33 }
 0x438   :  { %v1069_v35 = vpop.f32.mrf.mxu0 }
 0x439   :  { %v1070_v36 = vadd.f32 %v1069_v35, %v1051_v34 }
 0x43b   :  { %1072 = vst [vmem:[#allocation20] sm:$0x1] %v1070_v36 }
 0x43c   :  { %1083 = dma.vmem_to_hbm [thread:$0]  %s1079_s23, 16, %s1081_s2, [#allocation5]  }
 0x43d   :  { %1407 = dma.done.wait [#allocation5], 16  }
 0x43e   :  { %1408 = vsyncadd [#allocation5], 4294967280 }
 0x43f   :  { %1088 = vsyncpa [#allocation4], 1 }
 0x440   :  { %1089 = vsyncpa [#allocation7], 1 }
 0x441   :  { %1090 = vsyncpa [#allocation10], 1 }
 0x442   :  { %1091 = vsyncpa [#allocation13], 1 }
 0x443   :  { %1092 = vsyncpa [#allocation16], 1 }
 0x444   :  { %1093 = vsyncpa [#allocation19], 1 }
 0x445   :  { %1094 = vsyncpa [#allocation5], 1 }

</bundles_post_ra>
